<compile_context>
chip_gen: v6e
topology: v6e:2x2x1
jax: 0.10.0
libtpu: 0.0.40
codegen_flags: <defaults>
</compile_context>

<pallas_src>
import functools
import math

import jax
import jax.numpy as jnp
from jax.experimental import pallas as pl
from jax.experimental.pallas import tpu as pltpu  # noqa: F401  (TPU backend)

F32 = jnp.float32
BF16 = jnp.bfloat16


# --------------------------- fused Pallas kernel -----------------------------

def _fused_kernel(embed_ref, masks_ref, wstack_ref, vstack_ref, pstack_ref,
                  tstack_ref, out_ref,
                  *, n_layers, alpha, scale, eps, in_features, out_features,
                  variational):
    """Entire VariationalGNN forward for the whole batch, VMEM-resident."""
    B = masks_ref.shape[1]
    N = masks_ref.shape[2]
    D = in_features
    O = out_features
    inv_scale = 1.0 / scale
    NEG = -1e30

    imask = masks_ref[0]                      # (B, N) 0/1 encoder node mask
    omask = masks_ref[1]                      # (B, N) 0/1 decoder node mask

    def leaky(s):
        return jnp.where(s > 0, s, alpha * s)

    def layer_norm(x, gamma, beta):
        # torch semantics: unbiased std (sum/(n-1)), eps added to the std.
        n = x.shape[-1]
        mean = jnp.mean(x, axis=-1, keepdims=True)
        var = jnp.sum((x - mean) ** 2, axis=-1, keepdims=True) * (1.0 / (n - 1))
        inv = pl.reciprocal(jnp.sqrt(var) + eps, approx=True)        # EUP slot
        return gamma * (x - mean) * inv + beta

    def linear(x2d, w, b):
        # bf16 MXU operands, f32 accumulation.
        return jnp.dot(x2d.astype(BF16), w.astype(BF16),
                       preferred_element_type=F32) + b

    edge_ok = (imask[:, :, None] > 0) & (imask[:, None, :] > 0)      # (B, N, N)

    def attn_norm_elu(hlin, a_l, a_r, gamma, beta):
        # attention logits:  a . [h_p || h_q]  =  (h_p . a_left) + (h_q . a_right)
        s_l = jnp.sum(hlin * a_l, axis=-1)                           # (B, N)
        s_r = jnp.sum(hlin * a_r, axis=-1)                           # (B, N)
        s = leaky(s_l[:, :, None] + s_r[:, None, :]) * inv_scale     # (B, N, N)
        e = jnp.exp(jnp.where(edge_ok, s, NEG))                      # mask pre-exp
        rowsum = jnp.sum(e, axis=-1, keepdims=True)                  # (B, N, 1)
        agg = jnp.einsum("bqk,bkd->bqd", e.astype(BF16), hlin.astype(BF16),
                         preferred_element_type=F32)                 # (B, N, D)
        dead = rowsum == 0.0                                         # inactive rows
        inv_rs = pl.reciprocal(jnp.where(dead, 1.0, rowsum), approx=True)
        h_att = jnp.where(dead, hlin, agg * inv_rs)                  # identity fix-up
        y = layer_norm(h_att, gamma, beta)
        return jnp.where(y > 0, y, jnp.exp(y) - 1.0)                 # ELU

    # ------------------ encoder GraphLayers (concat=True) -------------------
    # Layer 0: W x + b is identical for every sample (same embedding) -> do it
    # once on (N, D) and broadcast; attention then diverges per sample.
    vec = vstack_ref[0]                                              # (5, D)
    hlin0 = linear(embed_ref[...].astype(F32), wstack_ref[0], vec[0:1])   # (N, D)
    h = attn_norm_elu(jnp.broadcast_to(hlin0[None], (B, N, D)),
                      vec[1:2], vec[2:3], vec[3:4], vec[4:5])

    for l in range(1, n_layers):                                     # static unroll
        vec = vstack_ref[l]                                          # b|a_l|a_r|g|b
        hlin = linear(h.reshape(B * N, D), wstack_ref[l],
                      vec[0:1]).reshape(B, N, D)
        h = attn_norm_elu(hlin, vec[1:2], vec[2:3], vec[3:4], vec[4:5])

    # --------------------------- variational ---------------------------------
    kl_ps = jnp.zeros((B, 1), F32)
    if variational:
        pw = pstack_ref[0:D, :]                                      # (D, 2O)
        pb = pstack_ref[D:D + 1, :]                                  # (1, 2O)
        p = linear(h.reshape(B * N, D), pw, pb).reshape(B, N, 2 * O)
        mu = p[..., :O]
        logvar = p[..., O:]
        h = mu                                                       # eval reparam
        per_node = jnp.sum(jnp.exp(logvar) - logvar - 1.0 + mu * mu, axis=-1)
        n_active = jnp.sum(imask, axis=-1, keepdims=True)            # == "split"
        kl_ps = 0.5 * jnp.sum(per_node * imask, axis=-1, keepdims=True) / n_active

    # --------------- decoder GraphLayer (concat=False), readout row only -----
    vec = vstack_ref[n_layers]                                       # (5, D)
    b, a_l, a_r, gamma, beta = (vec[0:1], vec[1:2], vec[2:3], vec[3:4], vec[4:5])
    hlin = linear(h.reshape(B * N, D), wstack_ref[n_layers], b).reshape(B, N, D)
    s_l = jnp.sum(hlin * a_l, axis=-1)                               # (B, N)
    s_r = jnp.sum(hlin * a_r, axis=-1)                               # (B, N)
    # only row N-1 (readout node) of the attention output is consumed downstream
    s_row = leaky(s_l[:, N - 1:N] + s_r) * inv_scale                 # (B, N)
    e_row = jnp.exp(jnp.where(omask > 0, s_row, NEG))                # (B, N)
    rowsum = jnp.sum(e_row, axis=-1, keepdims=True)                  # (B, 1) > 0
    agg = jnp.sum(e_row[:, :, None] * hlin, axis=1)                  # (B, D); N tiny
    h_last = agg * pl.reciprocal(rowsum, approx=True)                # (B, D)

    # concat=False tail: V(relu(norm(.)))
    y = layer_norm(h_last, gamma, beta)
    dec_vw = tstack_ref[0:D, :]                                      # (D, O)
    dec_vb = tstack_ref[D:D + 1, :]                                  # (1, O)
    y = linear(jnp.maximum(y, 0.0), dec_vw, dec_vb)                  # (B, O)

    # out_layer head: F.relu -> Linear(O,O) -> ReLU -> (Dropout=id) -> Linear(O,1)
    head_w1 = tstack_ref[D + 8:D + 8 + O, :]                         # (O, O)
    hv = tstack_ref[D + 8 + O:D + 8 + O + 8, :]                      # (8, O): b1|w2|b2|pad
    z = linear(jnp.maximum(y, 0.0), head_w1, hv[0:1])                # (B, O)
    z = jnp.maximum(z, 0.0)
    logit = jnp.sum(z * hv[1:2], axis=-1, keepdims=True) + hv[2:3, 0:1]  # (B, 1)

    # single lane-dense store: lane 0 = logit, lane 1 = per-sample KL, rest 0
    out_ref[...] = jnp.concatenate(
        [logit, kl_ps, jnp.zeros((B, out_ref.shape[1] - 2), F32)], axis=-1)


# --------------------------- parameters -------------------------------------

def init_params(key, *, in_features, out_features, num_nodes, n_layers):
    """Packed parameter buffers (all segments 8-sublane-aligned)."""
    D, O = in_features, out_features
    assert D == O, "variational path of the original model requires in == out"
    keys = iter(jax.random.split(key, 64))

    def rnd(shape, s=0.1):
        return jax.random.normal(next(keys), shape, F32) * s

    embed = rnd((num_nodes, D), 0.5).at[0].set(0.0)           # padding_idx = 0

    # n_layers encoder GraphLayers + 1 decoder GraphLayer, packed together.
    w_list, v_list = [], []
    for _ in range(n_layers + 1):
        w_list.append(rnd((D, D)))
        v_list.append(jnp.concatenate(
            [rnd((1, D)),                                     # b
             rnd((1, D)),                                     # a_left
             rnd((1, D)),                                     # a_right
             jnp.ones((1, D), F32),                           # gamma
             jnp.zeros((1, D), F32)], axis=0))                # beta
    wstack = jnp.stack(w_list)                                # (L+1, D, D)
    vstack = jnp.stack(v_list)                                # (L+1, 5, D)

    # parameterize: Linear(O, 2O).  rows [0:D]=W, row D=bias, pad to D+8 rows.
    pstack = jnp.concatenate(
        [rnd((D, 2 * O)), jnp.zeros((8, 2 * O), F32)], axis=0)       # (D+8, 2O)

    # tail: dec V (D,O) | dec V bias (8 rows, row 0) | head W1 (O,O) |
    #       head vec (8 rows: b1 | w2-row | b2 | pad)
    dec_vw = rnd((D, O))
    dec_vb = jnp.zeros((8, O), F32)
    head_w1 = rnd((O, O))
    head_vec = jnp.concatenate(
        [jnp.zeros((1, O), F32),                              # b1
         rnd((1, O)),                                         # w2 (row form)
         jnp.zeros((6, O), F32)], axis=0)                     # b2 (scalar @ [2,0]) + pad
    tstack = jnp.concatenate([dec_vw, dec_vb, head_w1, head_vec], axis=0)  # (D+O+16, O)

    return {"embed": embed, "wstack": wstack, "vstack": vstack,
            "pstack": pstack, "tstack": tstack}


# --------------------------- forward pass ------------------------------------

def variational_gnn_forward(params, data, *, alpha, n_heads, variational=True):
    B, Fdim = data.shape
    N = Fdim + 2                                              # self.num_of_nodes
    D = params["embed"].shape[1]
    O = params["tstack"].shape[1]
    n_layers = int(params["wstack"].shape[0]) - 1
    scale = math.sqrt(D * n_heads)

    # data_to_edges -> dense node masks (node 0 = padding, node N-1 = readout)
    base = data != 0                                          # (B, F)
    has = jnp.any(base, axis=1, keepdims=True)                # (B, 1)
    nodes = jnp.concatenate(
        [jnp.zeros((B, 1), bool), base, jnp.zeros((B, 1), bool)], axis=1)   # (B, N)
    onehot0 = (jnp.arange(N) == 0)[None, :]
    onehotL = (jnp.arange(N) == N - 1)[None, :]
    input_mask = jnp.where(has, nodes, onehot0)               # encoder edges
    output_mask = jnp.where(has, nodes | onehotL, onehotL)    # decoder edges
    masks = jnp.stack([input_mask, output_mask]).astype(F32)  # (2, B, N)

    kern = functools.partial(
        _fused_kernel, n_layers=n_layers, alpha=alpha, scale=scale,
        eps=1e-6, in_features=D, out_features=O, variational=variational)

    # No grid: whole batch in one step; every operand mapped fully into VMEM.
    out = pl.pallas_call(
        kern,
        out_shape=jax.ShapeDtypeStruct((B, 128), F32),        # lane-dense slab
    )(params["embed"], masks, params["wstack"], params["vstack"],
      params["pstack"], params["tstack"])

    logits = out[:, 0:1]                                      # (B, 1)
    kl_total = jnp.sum(out[:, 1])                             # scalar
    return logits, kl_total


# --------------------------- main --------------------------------------------

if __name__ == "__main__":
    key = jax.random.PRNGKey(0)
    B, Fdim = 2, 14                       # num_of_nodes(ctor)=14 -> N=16 graph nodes
    in_features = out_features = 32       # variational path requires in == out
    n_layers = 2
    n_heads = 1                           # concat LayerNorm broadcast requires 1 head
    alpha = 0.2
    N = Fdim + 2

    pkey, dkey = jax.random.split(key)
    params = init_params(pkey, in_features=in_features, out_features=out_features,
                         num_nodes=N, n_layers=n_layers)
    data = (jax.random.uniform(dkey, (B, Fdim)) < 0.35).astype(F32)   # multi-hot codes

    fwd = jax.jit(functools.partial(variational_gnn_forward,
                                    alpha=alpha, n_heads=n_heads, variational=True))
    logits, kl = fwd(params, data)
    jax.block_until_ready((logits, kl))
    assert logits.shape == (B, 1) and kl.shape == ()
    assert bool(jnp.all(jnp.isfinite(logits))) and bool(jnp.isfinite(kl))
    # TODO(synk): training-mode stochasticity (dropout, random nonzero subsampling in
    # data_to_edges, reparameterisation noise) and the none_graph_features>0 branch
    # are intentionally not modelled (eval mode, none_graph_features=0).
    print("KERNEL_OK")
</pallas_src>

<mosaic_0001>
module attributes {stable_mosaic.version = 11 : i64} {
  func.func @_fused_kernel(%arg0: memref<16x32xf32, #tpu.memory_space<vmem>>, %arg1: memref<2x2x16xf32, #tpu.memory_space<vmem>>, %arg2: memref<3x32x32xf32, #tpu.memory_space<vmem>>, %arg3: memref<3x5x32xf32, #tpu.memory_space<vmem>>, %arg4: memref<40x64xf32, #tpu.memory_space<vmem>>, %arg5: memref<80x32xf32, #tpu.memory_space<vmem>>, %arg6: memref<2x128xf32, #tpu.memory_space<vmem>>) attributes {dimension_semantics = [], scalar_prefetch = 0 : i64, scratch_operands = 0 : i64, tpu.core_type = #tpu.core_type<tc>} {
    %c0 = arith.constant 0 : index
    %c0_0 = arith.constant 0 : index
    %c0_1 = arith.constant 0 : index
    %0 = vector.load %arg1[%c0, %c0_0, %c0_1] : memref<2x2x16xf32, #tpu.memory_space<vmem>>, vector<1x2x16xf32>
    %1 = vector.shape_cast %0 : vector<1x2x16xf32> to vector<2x16xf32>
    %c1 = arith.constant 1 : index
    %c0_2 = arith.constant 0 : index
    %c0_3 = arith.constant 0 : index
    %2 = vector.load %arg1[%c1, %c0_2, %c0_3] : memref<2x2x16xf32, #tpu.memory_space<vmem>>, vector<1x2x16xf32>
    %3 = vector.shape_cast %2 : vector<1x2x16xf32> to vector<2x16xf32>
    %4 = vector.shape_cast %1 : vector<2x16xf32> to vector<2x16x1xf32>
    %cst = arith.constant 0.000000e+00 : f32
    %5 = vector.broadcast %cst : f32 to vector<2x16x1xf32>
    %6 = arith.cmpf ogt, %4, %5 : vector<2x16x1xf32>
    %7 = vector.shape_cast %1 : vector<2x16xf32> to vector<2x1x16xf32>
    %cst_4 = arith.constant 0.000000e+00 : f32
    %8 = vector.broadcast %cst_4 : f32 to vector<2x1x16xf32>
    %9 = arith.cmpf ogt, %7, %8 : vector<2x1x16xf32>
    %10 = vector.broadcast %6 : vector<2x16x1xi1> to vector<2x16x16xi1>
    %11 = vector.broadcast %9 : vector<2x1x16xi1> to vector<2x16x16xi1>
    %12 = arith.andi %10, %11 : vector<2x16x16xi1>
    %c0_5 = arith.constant 0 : index
    %c0_6 = arith.constant 0 : index
    %c0_7 = arith.constant 0 : index
    %13 = vector.load %arg3[%c0_5, %c0_6, %c0_7] : memref<3x5x32xf32, #tpu.memory_space<vmem>>, vector<1x5x32xf32>
    %14 = vector.shape_cast %13 : vector<1x5x32xf32> to vector<5x32xf32>
    %c0_8 = arith.constant 0 : index
    %c0_9 = arith.constant 0 : index
    %15 = vector.load %arg0[%c0_8, %c0_9] : memref<16x32xf32, #tpu.memory_space<vmem>>, vector<16x32xf32>
    %c0_10 = arith.constant 0 : index
    %c0_11 = arith.constant 0 : index
    %c0_12 = arith.constant 0 : index
    %16 = vector.load %arg2[%c0_10, %c0_11, %c0_12] : memref<3x32x32xf32, #tpu.memory_space<vmem>>, vector<1x32x32xf32>
    %17 = vector.shape_cast %16 : vector<1x32x32xf32> to vector<32x32xf32>
    %18 = vector.extract_strided_slice %14 {offsets = [0, 0], sizes = [1, 32], strides = [1, 1]} : vector<5x32xf32> to vector<1x32xf32>
    %19 = arith.truncf %15 : vector<16x32xf32> to vector<16x32xbf16>
    %20 = arith.truncf %17 : vector<32x32xf32> to vector<32x32xbf16>
    %cst_13 = arith.constant dense<0.000000e+00> : vector<16x32xf32>
    %21 = tpu.matmul %19, %20, %cst_13 {dimension_numbers = #tpu.dot_dimension_numbers<[1], [0], [0], [1], [0, 0, 1, 1], [], []>} : vector<16x32xbf16>, vector<32x32xbf16>, vector<16x32xf32> -> vector<16x32xf32>
    %22 = vector.broadcast %18 : vector<1x32xf32> to vector<16x32xf32>
    %23 = arith.addf %21, %22 : vector<16x32xf32>
    %24 = vector.shape_cast %23 : vector<16x32xf32> to vector<1x16x32xf32>
    %25 = vector.shape_cast %24 : vector<1x16x32xf32> to vector<1x16x32xf32>
    %26 = vector.broadcast %25 : vector<1x16x32xf32> to vector<2x16x32xf32>
    %27 = vector.extract_strided_slice %14 {offsets = [1, 0], sizes = [1, 32], strides = [1, 1]} : vector<5x32xf32> to vector<1x32xf32>
    %28 = vector.extract_strided_slice %14 {offsets = [2, 0], sizes = [1, 32], strides = [1, 1]} : vector<5x32xf32> to vector<1x32xf32>
    %29 = vector.extract_strided_slice %14 {offsets = [3, 0], sizes = [1, 32], strides = [1, 1]} : vector<5x32xf32> to vector<1x32xf32>
    %30 = vector.extract_strided_slice %14 {offsets = [4, 0], sizes = [1, 32], strides = [1, 1]} : vector<5x32xf32> to vector<1x32xf32>
    %31 = vector.shape_cast %27 : vector<1x32xf32> to vector<1x1x32xf32>
    %32 = vector.broadcast %31 : vector<1x1x32xf32> to vector<2x16x32xf32>
    %33 = arith.mulf %26, %32 : vector<2x16x32xf32>
    %cst_14 = arith.constant dense<0.000000e+00> : vector<2x16xf32>
    %34 = vector.multi_reduction <add>, %33, %cst_14 [2] : vector<2x16x32xf32> to vector<2x16xf32>
    %35 = vector.shape_cast %28 : vector<1x32xf32> to vector<1x1x32xf32>
    %36 = vector.broadcast %35 : vector<1x1x32xf32> to vector<2x16x32xf32>
    %37 = arith.mulf %26, %36 : vector<2x16x32xf32>
    %cst_15 = arith.constant dense<0.000000e+00> : vector<2x16xf32>
    %38 = vector.multi_reduction <add>, %37, %cst_15 [2] : vector<2x16x32xf32> to vector<2x16xf32>
    %39 = vector.shape_cast %34 : vector<2x16xf32> to vector<2x16x1xf32>
    %40 = vector.shape_cast %38 : vector<2x16xf32> to vector<2x1x16xf32>
    %41 = vector.broadcast %39 : vector<2x16x1xf32> to vector<2x16x16xf32>
    %42 = vector.broadcast %40 : vector<2x1x16xf32> to vector<2x16x16xf32>
    %43 = arith.addf %41, %42 : vector<2x16x16xf32>
    %cst_16 = arith.constant 0.000000e+00 : f32
    %44 = vector.broadcast %cst_16 : f32 to vector<2x16x16xf32>
    %45 = arith.cmpf ogt, %43, %44 : vector<2x16x16xf32>
    %cst_17 = arith.constant 2.000000e-01 : f32
    %46 = vector.broadcast %cst_17 : f32 to vector<2x16x16xf32>
    %47 = arith.mulf %46, %43 : vector<2x16x16xf32>
    %48 = arith.select %45, %43, %47 : vector<2x16x16xi1>, vector<2x16x16xf32>
    %cst_18 = arith.constant 0.176776692 : f32
    %49 = vector.broadcast %cst_18 : f32 to vector<2x16x16xf32>
    %50 = arith.mulf %48, %49 : vector<2x16x16xf32>
    %cst_19 = arith.constant -1.000000e+30 : f32
    %51 = vector.broadcast %cst_19 : f32 to vector<2x16x16xf32>
    %52 = arith.select %12, %50, %51 : vector<2x16x16xi1>, vector<2x16x16xf32>
    %53 = math.exp %52 : vector<2x16x16xf32>
    %cst_20 = arith.constant dense<0.000000e+00> : vector<2x16xf32>
    %54 = vector.multi_reduction <add>, %53, %cst_20 [2] : vector<2x16x16xf32> to vector<2x16xf32>
    %55 = vector.shape_cast %54 : vector<2x16xf32> to vector<2x16x1xf32>
    %56 = arith.truncf %53 : vector<2x16x16xf32> to vector<2x16x16xbf16>
    %57 = arith.truncf %26 : vector<2x16x32xf32> to vector<2x16x32xbf16>
    "tpu.trace_start"() <{level = 10 : i32, message = "bqk,bkd->bqd"}> : () -> ()
    %cst_21 = arith.constant dense<0.000000e+00> : vector<2x16x32xf32>
    %58 = tpu.matmul %56, %57, %cst_21 {dimension_numbers = #tpu.dot_dimension_numbers<[2], [1], [1], [2], [0, 0, 0, 1, 1, 2], [0], [0]>} : vector<2x16x16xbf16>, vector<2x16x32xbf16>, vector<2x16x32xf32> -> vector<2x16x32xf32>
    %cst_22 = arith.constant 0.000000e+00 : f32
    "tpu.trace_stop"() : () -> ()
    %59 = vector.broadcast %cst_22 : f32 to vector<2x16x1xf32>
    %60 = arith.cmpf oeq, %55, %59 : vector<2x16x1xf32>
    %cst_23 = arith.constant 1.000000e+00 : f32
    %61 = vector.broadcast %cst_23 : f32 to vector<2x16x1xf32>
    %62 = arith.select %60, %61, %55 : vector<2x16x1xi1>, vector<2x16x1xf32>
    %63 = tpu.reciprocal %62 {approx = true} : vector<2x16x1xf32> -> vector<2x16x1xf32>
    %64 = vector.broadcast %63 : vector<2x16x1xf32> to vector<2x16x32xf32>
    %65 = arith.mulf %58, %64 : vector<2x16x32xf32>
    %66 = vector.shape_cast %60 : vector<2x16x1xi1> to vector<2x16x1xi1>
    %67 = vector.broadcast %66 : vector<2x16x1xi1> to vector<2x16x32xi1>
    %68 = arith.select %67, %26, %65 : vector<2x16x32xi1>, vector<2x16x32xf32>
    %cst_24 = arith.constant dense<0.000000e+00> : vector<2x16xf32>
    %69 = vector.multi_reduction <add>, %68, %cst_24 [2] : vector<2x16x32xf32> to vector<2x16xf32>
    %70 = vector.shape_cast %69 : vector<2x16xf32> to vector<2x16x1xf32>
    %cst_25 = arith.constant 3.200000e+01 : f32
    %71 = vector.broadcast %cst_25 : f32 to vector<2x16x1xf32>
    %72 = arith.divf %70, %71 : vector<2x16x1xf32>
    %73 = vector.broadcast %72 : vector<2x16x1xf32> to vector<2x16x32xf32>
    %74 = arith.subf %68, %73 : vector<2x16x32xf32>
    %75 = arith.mulf %74, %74 : vector<2x16x32xf32>
    %cst_26 = arith.constant dense<0.000000e+00> : vector<2x16xf32>
    %76 = vector.multi_reduction <add>, %75, %cst_26 [2] : vector<2x16x32xf32> to vector<2x16xf32>
    %77 = vector.shape_cast %76 : vector<2x16xf32> to vector<2x16x1xf32>
    %cst_27 = arith.constant 0.0322580636 : f32
    %78 = vector.broadcast %cst_27 : f32 to vector<2x16x1xf32>
    %79 = arith.mulf %77, %78 : vector<2x16x1xf32>
    %80 = math.sqrt %79 : vector<2x16x1xf32>
    %cst_28 = arith.constant 9.99999997E-7 : f32
    %81 = vector.broadcast %cst_28 : f32 to vector<2x16x1xf32>
    %82 = arith.addf %80, %81 : vector<2x16x1xf32>
    %83 = tpu.reciprocal %82 {approx = true} : vector<2x16x1xf32> -> vector<2x16x1xf32>
    %84 = vector.broadcast %72 : vector<2x16x1xf32> to vector<2x16x32xf32>
    %85 = arith.subf %68, %84 : vector<2x16x32xf32>
    %86 = vector.shape_cast %29 : vector<1x32xf32> to vector<1x1x32xf32>
    %87 = vector.broadcast %86 : vector<1x1x32xf32> to vector<2x16x32xf32>
    %88 = arith.mulf %87, %85 : vector<2x16x32xf32>
    %89 = vector.broadcast %83 : vector<2x16x1xf32> to vector<2x16x32xf32>
    %90 = arith.mulf %88, %89 : vector<2x16x32xf32>
    %91 = vector.shape_cast %30 : vector<1x32xf32> to vector<1x1x32xf32>
    %92 = vector.broadcast %91 : vector<1x1x32xf32> to vector<2x16x32xf32>
    %93 = arith.addf %90, %92 : vector<2x16x32xf32>
    %cst_29 = arith.constant 0.000000e+00 : f32
    %94 = vector.broadcast %cst_29 : f32 to vector<2x16x32xf32>
    %95 = arith.cmpf ogt, %93, %94 : vector<2x16x32xf32>
    %96 = math.exp %93 : vector<2x16x32xf32>
    %cst_30 = arith.constant 1.000000e+00 : f32
    %97 = vector.broadcast %cst_30 : f32 to vector<2x16x32xf32>
    %98 = arith.subf %96, %97 : vector<2x16x32xf32>
    %99 = arith.select %95, %93, %98 : vector<2x16x32xi1>, vector<2x16x32xf32>
    %c1_31 = arith.constant 1 : index
    %c0_32 = arith.constant 0 : index
    %c0_33 = arith.constant 0 : index
    %100 = vector.load %arg3[%c1_31, %c0_32, %c0_33] : memref<3x5x32xf32, #tpu.memory_space<vmem>>, vector<1x5x32xf32>
    %101 = vector.shape_cast %100 : vector<1x5x32xf32> to vector<5x32xf32>
    %102 = vector.shape_cast %99 : vector<2x16x32xf32> to vector<32x32xf32>
    %c1_34 = arith.constant 1 : index
    %c0_35 = arith.constant 0 : index
    %c0_36 = arith.constant 0 : index
    %103 = vector.load %arg2[%c1_34, %c0_35, %c0_36] : memref<3x32x32xf32, #tpu.memory_space<vmem>>, vector<1x32x32xf32>
    %104 = vector.shape_cast %103 : vector<1x32x32xf32> to vector<32x32xf32>
    %105 = vector.extract_strided_slice %101 {offsets = [0, 0], sizes = [1, 32], strides = [1, 1]} : vector<5x32xf32> to vector<1x32xf32>
    %106 = arith.truncf %102 : vector<32x32xf32> to vector<32x32xbf16>
    %107 = arith.truncf %104 : vector<32x32xf32> to vector<32x32xbf16>
    %cst_37 = arith.constant dense<0.000000e+00> : vector<32x32xf32>
    %108 = tpu.matmul %106, %107, %cst_37 {dimension_numbers = #tpu.dot_dimension_numbers<[1], [0], [0], [1], [0, 0, 1, 1], [], []>} : vector<32x32xbf16>, vector<32x32xbf16>, vector<32x32xf32> -> vector<32x32xf32>
    %109 = vector.broadcast %105 : vector<1x32xf32> to vector<32x32xf32>
    %110 = arith.addf %108, %109 : vector<32x32xf32>
    %111 = vector.shape_cast %110 : vector<32x32xf32> to vector<2x16x32xf32>
    %112 = vector.extract_strided_slice %101 {offsets = [1, 0], sizes = [1, 32], strides = [1, 1]} : vector<5x32xf32> to vector<1x32xf32>
    %113 = vector.extract_strided_slice %101 {offsets = [2, 0], sizes = [1, 32], strides = [1, 1]} : vector<5x32xf32> to vector<1x32xf32>
    %114 = vector.extract_strided_slice %101 {offsets = [3, 0], sizes = [1, 32], strides = [1, 1]} : vector<5x32xf32> to vector<1x32xf32>
    %115 = vector.extract_strided_slice %101 {offsets = [4, 0], sizes = [1, 32], strides = [1, 1]} : vector<5x32xf32> to vector<1x32xf32>
    %116 = vector.shape_cast %112 : vector<1x32xf32> to vector<1x1x32xf32>
    %117 = vector.broadcast %116 : vector<1x1x32xf32> to vector<2x16x32xf32>
    %118 = arith.mulf %111, %117 : vector<2x16x32xf32>
    %cst_38 = arith.constant dense<0.000000e+00> : vector<2x16xf32>
    %119 = vector.multi_reduction <add>, %118, %cst_38 [2] : vector<2x16x32xf32> to vector<2x16xf32>
    %120 = vector.shape_cast %113 : vector<1x32xf32> to vector<1x1x32xf32>
    %121 = vector.broadcast %120 : vector<1x1x32xf32> to vector<2x16x32xf32>
    %122 = arith.mulf %111, %121 : vector<2x16x32xf32>
    %cst_39 = arith.constant dense<0.000000e+00> : vector<2x16xf32>
    %123 = vector.multi_reduction <add>, %122, %cst_39 [2] : vector<2x16x32xf32> to vector<2x16xf32>
    %124 = vector.shape_cast %119 : vector<2x16xf32> to vector<2x16x1xf32>
    %125 = vector.shape_cast %123 : vector<2x16xf32> to vector<2x1x16xf32>
    %126 = vector.broadcast %124 : vector<2x16x1xf32> to vector<2x16x16xf32>
    %127 = vector.broadcast %125 : vector<2x1x16xf32> to vector<2x16x16xf32>
    %128 = arith.addf %126, %127 : vector<2x16x16xf32>
    %cst_40 = arith.constant 0.000000e+00 : f32
    %129 = vector.broadcast %cst_40 : f32 to vector<2x16x16xf32>
    %130 = arith.cmpf ogt, %128, %129 : vector<2x16x16xf32>
    %cst_41 = arith.constant 2.000000e-01 : f32
    %131 = vector.broadcast %cst_41 : f32 to vector<2x16x16xf32>
    %132 = arith.mulf %131, %128 : vector<2x16x16xf32>
    %133 = arith.select %130, %128, %132 : vector<2x16x16xi1>, vector<2x16x16xf32>
    %cst_42 = arith.constant 0.176776692 : f32
    %134 = vector.broadcast %cst_42 : f32 to vector<2x16x16xf32>
    %135 = arith.mulf %133, %134 : vector<2x16x16xf32>
    %cst_43 = arith.constant -1.000000e+30 : f32
    %136 = vector.broadcast %cst_43 : f32 to vector<2x16x16xf32>
    %137 = arith.select %12, %135, %136 : vector<2x16x16xi1>, vector<2x16x16xf32>
    %138 = math.exp %137 : vector<2x16x16xf32>
    %cst_44 = arith.constant dense<0.000000e+00> : vector<2x16xf32>
    %139 = vector.multi_reduction <add>, %138, %cst_44 [2] : vector<2x16x16xf32> to vector<2x16xf32>
    %140 = vector.shape_cast %139 : vector<2x16xf32> to vector<2x16x1xf32>
    %141 = arith.truncf %138 : vector<2x16x16xf32> to vector<2x16x16xbf16>
    %142 = arith.truncf %111 : vector<2x16x32xf32> to vector<2x16x32xbf16>
    "tpu.trace_start"() <{level = 10 : i32, message = "bqk,bkd->bqd"}> : () -> ()
    %cst_45 = arith.constant dense<0.000000e+00> : vector<2x16x32xf32>
    %143 = tpu.matmul %141, %142, %cst_45 {dimension_numbers = #tpu.dot_dimension_numbers<[2], [1], [1], [2], [0, 0, 0, 1, 1, 2], [0], [0]>} : vector<2x16x16xbf16>, vector<2x16x32xbf16>, vector<2x16x32xf32> -> vector<2x16x32xf32>
    %cst_46 = arith.constant 0.000000e+00 : f32
    "tpu.trace_stop"() : () -> ()
    %144 = vector.broadcast %cst_46 : f32 to vector<2x16x1xf32>
    %145 = arith.cmpf oeq, %140, %144 : vector<2x16x1xf32>
    %cst_47 = arith.constant 1.000000e+00 : f32
    %146 = vector.broadcast %cst_47 : f32 to vector<2x16x1xf32>
    %147 = arith.select %145, %146, %140 : vector<2x16x1xi1>, vector<2x16x1xf32>
    %148 = tpu.reciprocal %147 {approx = true} : vector<2x16x1xf32> -> vector<2x16x1xf32>
    %149 = vector.broadcast %148 : vector<2x16x1xf32> to vector<2x16x32xf32>
    %150 = arith.mulf %143, %149 : vector<2x16x32xf32>
    %151 = vector.shape_cast %145 : vector<2x16x1xi1> to vector<2x16x1xi1>
    %152 = vector.broadcast %151 : vector<2x16x1xi1> to vector<2x16x32xi1>
    %153 = arith.select %152, %111, %150 : vector<2x16x32xi1>, vector<2x16x32xf32>
    %cst_48 = arith.constant dense<0.000000e+00> : vector<2x16xf32>
    %154 = vector.multi_reduction <add>, %153, %cst_48 [2] : vector<2x16x32xf32> to vector<2x16xf32>
    %155 = vector.shape_cast %154 : vector<2x16xf32> to vector<2x16x1xf32>
    %cst_49 = arith.constant 3.200000e+01 : f32
    %156 = vector.broadcast %cst_49 : f32 to vector<2x16x1xf32>
    %157 = arith.divf %155, %156 : vector<2x16x1xf32>
    %158 = vector.broadcast %157 : vector<2x16x1xf32> to vector<2x16x32xf32>
    %159 = arith.subf %153, %158 : vector<2x16x32xf32>
    %160 = arith.mulf %159, %159 : vector<2x16x32xf32>
    %cst_50 = arith.constant dense<0.000000e+00> : vector<2x16xf32>
    %161 = vector.multi_reduction <add>, %160, %cst_50 [2] : vector<2x16x32xf32> to vector<2x16xf32>
    %162 = vector.shape_cast %161 : vector<2x16xf32> to vector<2x16x1xf32>
    %cst_51 = arith.constant 0.0322580636 : f32
    %163 = vector.broadcast %cst_51 : f32 to vector<2x16x1xf32>
    %164 = arith.mulf %162, %163 : vector<2x16x1xf32>
    %165 = math.sqrt %164 : vector<2x16x1xf32>
    %cst_52 = arith.constant 9.99999997E-7 : f32
    %166 = vector.broadcast %cst_52 : f32 to vector<2x16x1xf32>
    %167 = arith.addf %165, %166 : vector<2x16x1xf32>
    %168 = tpu.reciprocal %167 {approx = true} : vector<2x16x1xf32> -> vector<2x16x1xf32>
    %169 = vector.broadcast %157 : vector<2x16x1xf32> to vector<2x16x32xf32>
    %170 = arith.subf %153, %169 : vector<2x16x32xf32>
    %171 = vector.shape_cast %114 : vector<1x32xf32> to vector<1x1x32xf32>
    %172 = vector.broadcast %171 : vector<1x1x32xf32> to vector<2x16x32xf32>
    %173 = arith.mulf %172, %170 : vector<2x16x32xf32>
    %174 = vector.broadcast %168 : vector<2x16x1xf32> to vector<2x16x32xf32>
    %175 = arith.mulf %173, %174 : vector<2x16x32xf32>
    %176 = vector.shape_cast %115 : vector<1x32xf32> to vector<1x1x32xf32>
    %177 = vector.broadcast %176 : vector<1x1x32xf32> to vector<2x16x32xf32>
    %178 = arith.addf %175, %177 : vector<2x16x32xf32>
    %cst_53 = arith.constant 0.000000e+00 : f32
    %179 = vector.broadcast %cst_53 : f32 to vector<2x16x32xf32>
    %180 = arith.cmpf ogt, %178, %179 : vector<2x16x32xf32>
    %181 = math.exp %178 : vector<2x16x32xf32>
    %cst_54 = arith.constant 1.000000e+00 : f32
    %182 = vector.broadcast %cst_54 : f32 to vector<2x16x32xf32>
    %183 = arith.subf %181, %182 : vector<2x16x32xf32>
    %184 = arith.select %180, %178, %183 : vector<2x16x32xi1>, vector<2x16x32xf32>
    %c0_55 = arith.constant 0 : index
    %c0_56 = arith.constant 0 : index
    %185 = vector.load %arg4[%c0_55, %c0_56] : memref<40x64xf32, #tpu.memory_space<vmem>>, vector<32x64xf32>
    %c32 = arith.constant 32 : index
    %c0_57 = arith.constant 0 : index
    %186 = vector.load %arg4[%c32, %c0_57] : memref<40x64xf32, #tpu.memory_space<vmem>>, vector<1x64xf32>
    %187 = vector.shape_cast %184 : vector<2x16x32xf32> to vector<32x32xf32>
    %188 = arith.truncf %187 : vector<32x32xf32> to vector<32x32xbf16>
    %189 = arith.truncf %185 : vector<32x64xf32> to vector<32x64xbf16>
    %cst_58 = arith.constant dense<0.000000e+00> : vector<32x64xf32>
    %190 = tpu.matmul %188, %189, %cst_58 {dimension_numbers = #tpu.dot_dimension_numbers<[1], [0], [0], [1], [0, 0, 1, 1], [], []>} : vector<32x32xbf16>, vector<32x64xbf16>, vector<32x64xf32> -> vector<32x64xf32>
    %191 = vector.broadcast %186 : vector<1x64xf32> to vector<32x64xf32>
    %192 = arith.addf %190, %191 : vector<32x64xf32>
    %193 = vector.shape_cast %192 : vector<32x64xf32> to vector<2x16x64xf32>
    %194 = vector.extract_strided_slice %193 {offsets = [0, 0, 0], sizes = [2, 16, 32], strides = [1, 1, 1]} : vector<2x16x64xf32> to vector<2x16x32xf32>
    %195 = vector.extract_strided_slice %193 {offsets = [0, 0, 32], sizes = [2, 16, 32], strides = [1, 1, 1]} : vector<2x16x64xf32> to vector<2x16x32xf32>
    %196 = math.exp %195 : vector<2x16x32xf32>
    %197 = arith.subf %196, %195 : vector<2x16x32xf32>
    %cst_59 = arith.constant 1.000000e+00 : f32
    %198 = vector.broadcast %cst_59 : f32 to vector<2x16x32xf32>
    %199 = arith.subf %197, %198 : vector<2x16x32xf32>
    %200 = arith.mulf %194, %194 : vector<2x16x32xf32>
    %201 = arith.addf %199, %200 : vector<2x16x32xf32>
    %cst_60 = arith.constant dense<0.000000e+00> : vector<2x16xf32>
    %202 = vector.multi_reduction <add>, %201, %cst_60 [2] : vector<2x16x32xf32> to vector<2x16xf32>
    %cst_61 = arith.constant dense<0.000000e+00> : vector<2xf32>
    %203 = vector.multi_reduction <add>, %1, %cst_61 [1] : vector<2x16xf32> to vector<2xf32>
    %204 = vector.shape_cast %203 : vector<2xf32> to vector<2x1xf32>
    %205 = arith.mulf %202, %1 : vector<2x16xf32>
    %cst_62 = arith.constant dense<0.000000e+00> : vector<2xf32>
    %206 = vector.multi_reduction <add>, %205, %cst_62 [1] : vector<2x16xf32> to vector<2xf32>
    %207 = vector.shape_cast %206 : vector<2xf32> to vector<2x1xf32>
    %cst_63 = arith.constant 5.000000e-01 : f32
    %208 = vector.broadcast %cst_63 : f32 to vector<2x1xf32>
    %209 = arith.mulf %208, %207 : vector<2x1xf32>
    %210 = arith.divf %209, %204 : vector<2x1xf32>
    %c2 = arith.constant 2 : index
    %c0_64 = arith.constant 0 : index
    %c0_65 = arith.constant 0 : index
    %211 = vector.load %arg3[%c2, %c0_64, %c0_65] : memref<3x5x32xf32, #tpu.memory_space<vmem>>, vector<1x5x32xf32>
    %212 = vector.shape_cast %211 : vector<1x5x32xf32> to vector<5x32xf32>
    %213 = vector.extract_strided_slice %212 {offsets = [0, 0], sizes = [1, 32], strides = [1, 1]} : vector<5x32xf32> to vector<1x32xf32>
    %214 = vector.extract_strided_slice %212 {offsets = [1, 0], sizes = [1, 32], strides = [1, 1]} : vector<5x32xf32> to vector<1x32xf32>
    %215 = vector.extract_strided_slice %212 {offsets = [2, 0], sizes = [1, 32], strides = [1, 1]} : vector<5x32xf32> to vector<1x32xf32>
    %216 = vector.extract_strided_slice %212 {offsets = [3, 0], sizes = [1, 32], strides = [1, 1]} : vector<5x32xf32> to vector<1x32xf32>
    %217 = vector.extract_strided_slice %212 {offsets = [4, 0], sizes = [1, 32], strides = [1, 1]} : vector<5x32xf32> to vector<1x32xf32>
    %218 = vector.shape_cast %194 : vector<2x16x32xf32> to vector<32x32xf32>
    %c2_66 = arith.constant 2 : index
    %c0_67 = arith.constant 0 : index
    %c0_68 = arith.constant 0 : index
    %219 = vector.load %arg2[%c2_66, %c0_67, %c0_68] : memref<3x32x32xf32, #tpu.memory_space<vmem>>, vector<1x32x32xf32>
    %220 = vector.shape_cast %219 : vector<1x32x32xf32> to vector<32x32xf32>
    %221 = arith.truncf %218 : vector<32x32xf32> to vector<32x32xbf16>
    %222 = arith.truncf %220 : vector<32x32xf32> to vector<32x32xbf16>
    %cst_69 = arith.constant dense<0.000000e+00> : vector<32x32xf32>
    %223 = tpu.matmul %221, %222, %cst_69 {dimension_numbers = #tpu.dot_dimension_numbers<[1], [0], [0], [1], [0, 0, 1, 1], [], []>} : vector<32x32xbf16>, vector<32x32xbf16>, vector<32x32xf32> -> vector<32x32xf32>
    %224 = vector.broadcast %213 : vector<1x32xf32> to vector<32x32xf32>
    %225 = arith.addf %223, %224 : vector<32x32xf32>
    %226 = vector.shape_cast %225 : vector<32x32xf32> to vector<2x16x32xf32>
    %227 = vector.shape_cast %214 : vector<1x32xf32> to vector<1x1x32xf32>
    %228 = vector.broadcast %227 : vector<1x1x32xf32> to vector<2x16x32xf32>
    %229 = arith.mulf %226, %228 : vector<2x16x32xf32>
    %cst_70 = arith.constant dense<0.000000e+00> : vector<2x16xf32>
    %230 = vector.multi_reduction <add>, %229, %cst_70 [2] : vector<2x16x32xf32> to vector<2x16xf32>
    %231 = vector.shape_cast %215 : vector<1x32xf32> to vector<1x1x32xf32>
    %232 = vector.broadcast %231 : vector<1x1x32xf32> to vector<2x16x32xf32>
    %233 = arith.mulf %226, %232 : vector<2x16x32xf32>
    %cst_71 = arith.constant dense<0.000000e+00> : vector<2x16xf32>
    %234 = vector.multi_reduction <add>, %233, %cst_71 [2] : vector<2x16x32xf32> to vector<2x16xf32>
    %235 = vector.extract_strided_slice %230 {offsets = [0, 15], sizes = [2, 1], strides = [1, 1]} : vector<2x16xf32> to vector<2x1xf32>
    %236 = vector.broadcast %235 : vector<2x1xf32> to vector<2x16xf32>
    %237 = arith.addf %236, %234 : vector<2x16xf32>
    %cst_72 = arith.constant 0.000000e+00 : f32
    %238 = vector.broadcast %cst_72 : f32 to vector<2x16xf32>
    %239 = arith.cmpf ogt, %237, %238 : vector<2x16xf32>
    %cst_73 = arith.constant 2.000000e-01 : f32
    %240 = vector.broadcast %cst_73 : f32 to vector<2x16xf32>
    %241 = arith.mulf %240, %237 : vector<2x16xf32>
    %242 = arith.select %239, %237, %241 : vector<2x16xi1>, vector<2x16xf32>
    %cst_74 = arith.constant 0.176776692 : f32
    %243 = vector.broadcast %cst_74 : f32 to vector<2x16xf32>
    %244 = arith.mulf %242, %243 : vector<2x16xf32>
    %cst_75 = arith.constant 0.000000e+00 : f32
    %245 = vector.broadcast %cst_75 : f32 to vector<2x16xf32>
    %246 = arith.cmpf ogt, %3, %245 : vector<2x16xf32>
    %cst_76 = arith.constant -1.000000e+30 : f32
    %247 = vector.broadcast %cst_76 : f32 to vector<2x16xf32>
    %248 = arith.select %246, %244, %247 : vector<2x16xi1>, vector<2x16xf32>
    %249 = math.exp %248 : vector<2x16xf32>
    %cst_77 = arith.constant dense<0.000000e+00> : vector<2xf32>
    %250 = vector.multi_reduction <add>, %249, %cst_77 [1] : vector<2x16xf32> to vector<2xf32>
    %251 = vector.shape_cast %250 : vector<2xf32> to vector<2x1xf32>
    %252 = vector.shape_cast %249 : vector<2x16xf32> to vector<2x16x1xf32>
    %253 = vector.broadcast %252 : vector<2x16x1xf32> to vector<2x16x32xf32>
    %254 = arith.mulf %253, %226 : vector<2x16x32xf32>
    %cst_78 = arith.constant dense<0.000000e+00> : vector<2x32xf32>
    %255 = vector.multi_reduction <add>, %254, %cst_78 [1] : vector<2x16x32xf32> to vector<2x32xf32>
    %256 = tpu.reciprocal %251 {approx = true} : vector<2x1xf32> -> vector<2x1xf32>
    %257 = vector.broadcast %256 : vector<2x1xf32> to vector<2x32xf32>
    %258 = arith.mulf %255, %257 : vector<2x32xf32>
    %cst_79 = arith.constant dense<0.000000e+00> : vector<2xf32>
    %259 = vector.multi_reduction <add>, %258, %cst_79 [1] : vector<2x32xf32> to vector<2xf32>
    %260 = vector.shape_cast %259 : vector<2xf32> to vector<2x1xf32>
    %cst_80 = arith.constant 3.200000e+01 : f32
    %261 = vector.broadcast %cst_80 : f32 to vector<2x1xf32>
    %262 = arith.divf %260, %261 : vector<2x1xf32>
    %263 = vector.broadcast %262 : vector<2x1xf32> to vector<2x32xf32>
    %264 = arith.subf %258, %263 : vector<2x32xf32>
    %265 = arith.mulf %264, %264 : vector<2x32xf32>
    %cst_81 = arith.constant dense<0.000000e+00> : vector<2xf32>
    %266 = vector.multi_reduction <add>, %265, %cst_81 [1] : vector<2x32xf32> to vector<2xf32>
    %267 = vector.shape_cast %266 : vector<2xf32> to vector<2x1xf32>
    %cst_82 = arith.constant 0.0322580636 : f32
    %268 = vector.broadcast %cst_82 : f32 to vector<2x1xf32>
    %269 = arith.mulf %267, %268 : vector<2x1xf32>
    %270 = math.sqrt %269 : vector<2x1xf32>
    %cst_83 = arith.constant 9.99999997E-7 : f32
    %271 = vector.broadcast %cst_83 : f32 to vector<2x1xf32>
    %272 = arith.addf %270, %271 : vector<2x1xf32>
    %273 = tpu.reciprocal %272 {approx = true} : vector<2x1xf32> -> vector<2x1xf32>
    %274 = vector.broadcast %262 : vector<2x1xf32> to vector<2x32xf32>
    %275 = arith.subf %258, %274 : vector<2x32xf32>
    %276 = vector.broadcast %216 : vector<1x32xf32> to vector<2x32xf32>
    %277 = arith.mulf %276, %275 : vector<2x32xf32>
    %278 = vector.broadcast %273 : vector<2x1xf32> to vector<2x32xf32>
    %279 = arith.mulf %277, %278 : vector<2x32xf32>
    %280 = vector.broadcast %217 : vector<1x32xf32> to vector<2x32xf32>
    %281 = arith.addf %279, %280 : vector<2x32xf32>
    %c0_84 = arith.constant 0 : index
    %c0_85 = arith.constant 0 : index
    %282 = vector.load %arg5[%c0_84, %c0_85] : memref<80x32xf32, #tpu.memory_space<vmem>>, vector<32x32xf32>
    %c32_86 = arith.constant 32 : index
    %c0_87 = arith.constant 0 : index
    %283 = vector.load %arg5[%c32_86, %c0_87] : memref<80x32xf32, #tpu.memory_space<vmem>>, vector<1x32xf32>
    %cst_88 = arith.constant 0.000000e+00 : f32
    %284 = vector.broadcast %cst_88 : f32 to vector<2x32xf32>
    %285 = arith.maximumf %281, %284 : vector<2x32xf32>
    %286 = arith.truncf %285 : vector<2x32xf32> to vector<2x32xbf16>
    %287 = arith.truncf %282 : vector<32x32xf32> to vector<32x32xbf16>
    %cst_89 = arith.constant dense<0.000000e+00> : vector<2x32xf32>
    %288 = tpu.matmul %286, %287, %cst_89 {dimension_numbers = #tpu.dot_dimension_numbers<[1], [0], [0], [1], [0, 0, 1, 1], [], []>} : vector<2x32xbf16>, vector<32x32xbf16>, vector<2x32xf32> -> vector<2x32xf32>
    %289 = vector.broadcast %283 : vector<1x32xf32> to vector<2x32xf32>
    %290 = arith.addf %288, %289 : vector<2x32xf32>
    %c40 = arith.constant 40 : index
    %c0_90 = arith.constant 0 : index
    %291 = vector.load %arg5[%c40, %c0_90] : memref<80x32xf32, #tpu.memory_space<vmem>>, vector<32x32xf32>
    %c72 = arith.constant 72 : index
    %c0_91 = arith.constant 0 : index
    %292 = vector.load %arg5[%c72, %c0_91] : memref<80x32xf32, #tpu.memory_space<vmem>>, vector<8x32xf32>
    %cst_92 = arith.constant 0.000000e+00 : f32
    %293 = vector.broadcast %cst_92 : f32 to vector<2x32xf32>
    %294 = arith.maximumf %290, %293 : vector<2x32xf32>
    %295 = vector.extract_strided_slice %292 {offsets = [0, 0], sizes = [1, 32], strides = [1, 1]} : vector<8x32xf32> to vector<1x32xf32>
    %296 = arith.truncf %294 : vector<2x32xf32> to vector<2x32xbf16>
    %297 = arith.truncf %291 : vector<32x32xf32> to vector<32x32xbf16>
    %cst_93 = arith.constant dense<0.000000e+00> : vector<2x32xf32>
    %298 = tpu.matmul %296, %297, %cst_93 {dimension_numbers = #tpu.dot_dimension_numbers<[1], [0], [0], [1], [0, 0, 1, 1], [], []>} : vector<2x32xbf16>, vector<32x32xbf16>, vector<2x32xf32> -> vector<2x32xf32>
    %299 = vector.broadcast %295 : vector<1x32xf32> to vector<2x32xf32>
    %300 = arith.addf %298, %299 : vector<2x32xf32>
    %cst_94 = arith.constant 0.000000e+00 : f32
    %301 = vector.broadcast %cst_94 : f32 to vector<2x32xf32>
    %302 = arith.maximumf %300, %301 : vector<2x32xf32>
    %303 = vector.extract_strided_slice %292 {offsets = [1, 0], sizes = [1, 32], strides = [1, 1]} : vector<8x32xf32> to vector<1x32xf32>
    %304 = vector.broadcast %303 : vector<1x32xf32> to vector<2x32xf32>
    %305 = arith.mulf %302, %304 : vector<2x32xf32>
    %cst_95 = arith.constant dense<0.000000e+00> : vector<2xf32>
    %306 = vector.multi_reduction <add>, %305, %cst_95 [1] : vector<2x32xf32> to vector<2xf32>
    %307 = vector.shape_cast %306 : vector<2xf32> to vector<2x1xf32>
    %308 = vector.extract_strided_slice %292 {offsets = [2, 0], sizes = [1, 1], strides = [1, 1]} : vector<8x32xf32> to vector<1x1xf32>
    %309 = vector.broadcast %308 : vector<1x1xf32> to vector<2x1xf32>
    %310 = arith.addf %307, %309 : vector<2x1xf32>
    %cst_96 = arith.constant 0.000000e+00 : f32
    %311 = vector.broadcast %cst_96 : f32 to vector<2x126xf32>
    %312 = tpu.concatenate %310, %210, %311 in 1 : vector<2x1xf32>, vector<2x1xf32>, vector<2x126xf32> -> vector<2x128xf32>
    %c0_97 = arith.constant 0 : index
    %c0_98 = arith.constant 0 : index
    %313 = vector.load %arg6[%c0_97, %c0_98] : memref<2x128xf32, #tpu.memory_space<vmem>>, vector<2x128xf32>
    tpu.vector_store %arg6[%c0_97, %c0_98], %312 {strides = array<i32>} : memref<2x128xf32, #tpu.memory_space<vmem>>, vector<2x128xf32>,
    return
  }
}

</mosaic_0001>

<bundles_post_ra>
// kernel: variational_gnn_forward.1
= control target key start
LH: loop header
LB: loop body
LE: loop exit
PB: predicated region body
PF: predicated region fallthrough
CT: control target
= control target key end

     0   :  { %v1770_v0 = vmov 0.0   ;;  %vm1771_vm0 = vmmov 0   ;;  %vm118_vm1 = vcmask 261120   ;;  %v27_v10 = vlaneseq  ;;  %s1774_s16 = smov 32   ;;  %s1775_s17 = smov 96   ;;  %s2319_s2 = inlined_call_operand.vmem [shape: f32[3,32,32], index: 2, kind: input, shape index: {}]   ;;  %s2320_s0 = inlined_call_operand.vmem [shape: f32[16,32], index: 0, kind: input, shape index: {}]   ;;  %s2321_s3 = inlined_call_operand.vmem [shape: f32[3,5,32], index: 3, kind: input, shape index: {}]   ;;  %s2322_s1 = inlined_call_operand.vmem [shape: f32[2,2,16], index: 1, kind: input, shape index: {}]   ;;  %s2323_s4 = inlined_call_operand.vmem [shape: f32[40,64], index: 4, kind: input, shape index: {}]   ;;  %s2324_s5 = inlined_call_operand.vmem [shape: f32[80,32], index: 5, kind: input, shape index: {}]   ;;  %s2325_s6 = inlined_call_operand.vmem [shape: f32[2,128], index: 6, kind: output, shape index: {}]  }
   0x1   :  { %1591 = vmatprep.subr.bf16.mxu0 %v1770_v0  ;;  %v109_v1 = vld [vmem:[%s2319_s2 + $0x10] sm:$0xff]  ;;  %v110_v2 = vld [vmem:[%s2319_s2 + $0x18] sm:$0xff]  ;;  %v107_v3 = vld [vmem:[%s2319_s2] sm:$0xff]  ;;  %1595 = vmatprep.mubr.msk.bf16.mxu0 %vm1771_vm0, %v1770_v0  ;;  %v1772_v33 = vmov 0   ;;  %v1773_v38 = vmov 1966171168  }
   0x2   :  { %v113_v4 = vpack.c.bf16 %v110_v2, %v109_v1  ;;  %v108_v5 = vld [vmem:[%s2319_s2 + $0x8] sm:$0xff]  ;;  %1599 = vmatprep.subr.bf16.mxu1 %v1770_v0  ;;  %1601 = vmatprep.mubr.msk.bf16.mxu1 %vm1771_vm0, %v1770_v0  ;;  %v105_v7 = vld [vmem:[%s2320_s0] sm:$0xff]  ;;  %v1837_v11 = vshrl.u32 %v27_v10, 7  ;;  %v55_v39 = vunpack.c.l.s4 %v1773_v38  ;;  %v190_v44 = vand.u32 127, %v27_v10 }
   0x3   :  { %v112_v6 = vpack.c.bf16 %v108_v5, %v107_v3  ;;  %v106_v8 = vld [vmem:[%s2320_s0 + $0x8] sm:$0xff]  ;;  %v1845_v13 = vld [vmem:[%s2321_s3] sm:$0x1f]  ;;  %1669 = vset.pattern.permute.xlu1 %v1772_v33  ;;  %1670 = vset.pattern.permute.xlu0 %v1772_v33  ;;  %vm200_vm4 = vcmask 130112   ;;  %vm238_vm12 = vcmask 130048  }
   0x4   :  { %1592 = vmatpush3.bf16.msra.mxu0 %v113_v4  ;;  %v111_v9 = vpack.c.bf16 %v106_v8, %v105_v7  ;;  %v1840_v12 = vsub.s32 0, %v1837_v11  ;;  %v1848_v14 = vsub.s32 2, %v1837_v11  ;;  %v1851_v15 = vsub.s32 1, %v1837_v11  ;;  %v24_v32 = vld [vmem:[%s2322_s1] sm:$0x3] }
   0x5   :  { %1593 = vmatprep.subr.bf16.mxu0 %v1770_v0  ;;  %v56_v40 = vunpack.c.0.s8 %v55_v39  ;;  %v195_v46 = vadd.s32 4294967288, %v190_v44  ;;  %v1892_v50 = vsub.s32 %v190_v44, %v1837_v11 }
   0x6   :  { %v117_v16 = vrot.slane %v1845_v13, %v1840_v12  ;;  %v178_v17 = vrot.slane %v1845_v13, %v1848_v14  ;;  %v166_v18 = vrot.slane %v1845_v13, %v1851_v15  ;;  %v1879_v34 = vrot.slane %v24_v32, %v1840_v12 }
   0x7   :  { %v1883_v35 = vrot.slane %v24_v32, %v1851_v15  ;;  %v59_v41 = vsub.s32 %v56_v40, %v1837_v11  ;;  %v1895_v51 = vsub.s32 %v195_v46, %v1837_v11 }
   0x8   :  { %1594 = vmatpush3.bf16.msra.mxu0 %v112_v6 }
   0x9   :  { %v60_v42 = vrot.slane %v24_v32, %v59_v41 }
   0xb   :  { %1596 = vmatmul.mubr.msk.bf16.vlgmr.msra.gmra.mxu0 %vm118_vm1, %v111_v9  ;;  %v61_v43 = vcombine.high %v60_v42, %v60_v42  ;;  %v68_v45 = vrot.slane %v60_v42, %v59_v41 }
   0xd   :  { %v75_v47 = vrot.slane %v61_v43, %v59_v41  ;;  %vm78_vm2 = vcmp.gt.f32.partialorder %v68_v45, 0.0 }
   0xe   :  { %v88_v52 = vsel %vm78_vm2, 1, %v1772_v33 }
   0xf   :  { %vm79_vm3 = vcmp.gt.f32.partialorder %v75_v47, 0.0  ;;  %v93_v58 = vrot.slane %v88_v52, %v1840_v12 }
  0x10   :  { %v89_v55 = vsel %vm79_vm3, 1, %v1772_v33 }
  0x11   :  { %v97_v60 = vrot.slane %v89_v55, %v1840_v12  ;;  %vm1902_vm7 = vcmp.eq.s32.totalorder %v93_v58, 1 }
  0x13   :  { %vm1906_vm8 = vcmp.eq.s32.totalorder %v97_v60, 1 }
  0xcb   :  { %v156_v19 = vpop.f32.mrf.mxu0 }
  0xcc   :  { %v1859_v20 = vadd.f32 %v156_v19, %v117_v16 }
  0xcd   :  { %v1597_v21 = vpop.f32.mrf.mxu0 }
  0xce   :  { %v179_v22 = vmul.f32 %v178_v17, %v1859_v20  ;;  %v167_v23 = vmul.f32 %v166_v18, %v1859_v20 }
  0xcf   :  { %v159_v24 = vpop.f32.mrf.mxu0 }
  0xd0   :  { %v1863_v25 = vadd.f32 %v159_v24, %v117_v16  ;;  %v181_v26 = vsel %vm118_vm1, %v179_v22, 0.0  ;;  %v169_v27 = vsel %vm118_vm1, %v167_v23, 0.0 }
  0xd1   :  { %182 = vadd.xlane.f32.xlu0 %v181_v26  ;;  %170 = vadd.xlane.f32.xlu1 %v169_v27  ;;  %v1598_v28 = vpop.f32.mrf.mxu0 }
  0xd2   :  { %v1869_v29 = vpack.c.bf16 %v1863_v25, %v1859_v20  ;;  %v180_v30 = vmul.f32 %v178_v17, %v1863_v25  ;;  %v168_v36 = vmul.f32 %v166_v18, %v1863_v25 }
  0xd4   :  { %1600 = vmatpush3.bf16.msra.mxu1 %v1869_v29  ;;  %v184_v31 = vsel %vm118_vm1, %v180_v30, 0.0  ;;  %v172_v37 = vsel %vm118_vm1, %v168_v36, 0.0 }
  0xd5   :  { %185 = vadd.xlane.f32.xlu0 %v184_v31  ;;  %1605 = vmatprep.subr.bf16.mxu1 %v1770_v0 }
  0xe2   :  { %36 = vbcast.lane.b32.xlu1 %v1879_v34, 264 }
  0xe6   :  { %43 = vbcast.lane.b32.xlu1 %v1883_v35, 256 }
  0xeb   :  { %32 = vbcast.lane.b32.xlu0 %v1879_v34, 256 }
 0x10a   :  { %173 = vadd.xlane.f32.xlu1 %v172_v37 }
 0x11b   :  { %47 = vbcast.lane.b32.xlu1 %v1883_v35, 264 }
 0x15a   :  { %v183_v48 = vpop.xlane.xlu0 %182  ;;  %v171_v49 = vpop.xlane.xlu1 %170 }
 0x15b   :  { %v194_v56 = vrot.slane %v183_v48, %v1892_v50 }
 0x15e   :  { %v37_v53 = vpop.permute.xlu1 %36  ;;  %v186_v54 = vpop.xlane.xlu0 %185 }
 0x15f   :  { %v199_v57 = vrot.slane %v186_v54, %v1895_v51  ;;  %vm50_vm14 = vcmp.gt.f32.partialorder %v37_v53, 0.0 }
 0x160   :  { %vm1936_vm3 = vmand %vm50_vm14, %vm1902_vm7 }
 0x161   :  { %v201_v59 = vsel %vm200_vm4, %v199_v57, %v194_v56 }
 0x162   :  { %v216_v61 = vadd.f32 %v201_v59, %v171_v49  ;;  %v44_v62 = vpop.permute.xlu1 %43  ;;  %v33_v63 = vpop.permute.xlu0 %32 }
 0x163   :  { %vm49_vm5 = vcmp.gt.f32.partialorder %v33_v63, 0.0  ;;  %vm51_vm9 = vcmp.gt.f32.partialorder %v44_v62, 0.0 }
 0x164   :  { %vm218_vm6 = vcmp.gt.f32.partialorder %v216_v61, 0.0  ;;  %v220_v1 = vmul.f32 0.2, %v216_v61  ;;  %vm1912_vm10 = vmand %vm49_vm5, %vm1902_vm7 }
 0x165   :  { %vm1918_vm11 = vmand %vm51_vm9, %vm1906_vm8 }
 0x166   :  { %v222_v4 = vsel %vm218_vm6, %v216_v61, %v220_v1 }
 0x167   :  { %v224_v6 = vmul.f32 0.17677669, %v222_v4 }
 0x169   :  { %v228_v8 = vsel %vm1918_vm11, %v224_v6, -1e+30  ;;  %v226_v9 = vsel %vm1912_vm10, %v224_v6, -1e+30 }
 0x16a   :  { %v230_v10 = vmul.f32 1.442695, %v226_v9  ;;  %v234_v16 = vmul.f32 1.442695, %v228_v8 }
 0x16c   :  { %1671 = vpow2.f32 %v230_v10 }
 0x16d   :  { %1673 = vpow2.f32 %v234_v16 }
 0x179   :  { %v1672_v17 = vpop.eup %1671 }
 0x17a   :  { %v239_v18 = vsel %vm238_vm12, %v1672_v17, 0.0  ;;  %v1674_v19 = vpop.eup %1673 }
 0x17b   :  { %240 = vadd.xlane.f32.xlu0 %v239_v18  ;;  %v245_v21 = vsel %vm238_vm12, %v1674_v19, 0.0 }
 0x17f   :  { %246 = vadd.xlane.f32.xlu0 %v245_v21 }
 0x193   :  { %v174_v22 = vpop.xlane.xlu1 %173 }
 0x194   :  { %v217_v23 = vadd.f32 %v201_v59, %v174_v22 }
 0x196   :  { %vm219_vm13 = vcmp.gt.f32.partialorder %v217_v23, 0.0  ;;  %v221_v24 = vmul.f32 0.2, %v217_v23 }
 0x197   :  { %v48_v26 = vpop.permute.xlu1 %47 }
 0x198   :  { %v223_v27 = vsel %vm219_vm13, %v217_v23, %v221_v24  ;;  %vm52_vm15 = vcmp.gt.f32.partialorder %v48_v26, 0.0 }
 0x199   :  { %v225_v28 = vmul.f32 0.17677669, %v223_v27  ;;  %vm1930_vm2 = vmand %vm52_vm15, %vm1906_vm8 }
 0x19b   :  { %v227_v32 = vsel %vm1936_vm3, %v225_v28, -1e+30  ;;  %v229_v33 = vsel %vm1930_vm2, %v225_v28, -1e+30 }
 0x19c   :  { %v232_v36 = vmul.f32 1.442695, %v227_v32  ;;  %v236_v37 = vmul.f32 1.442695, %v229_v33 }
 0x19e   :  { %1675 = vpow2.f32 %v232_v36 }
 0x19f   :  { %1677 = vpow2.f32 %v236_v37 }
 0x1ab   :  { %v1676_v38 = vpop.eup %1675 }
 0x1ac   :  { %v1678_v39 = vpop.eup %1677  ;;  %v242_v40 = vsel %vm238_vm12, %v1676_v38, 0.0  ;;  %v251_v41 = vpack.c.bf16 %v1676_v38, %v1672_v17 }
 0x1ad   :  { %243 = vadd.xlane.f32.xlu1 %v242_v40  ;;  %v248_v42 = vsel %vm238_vm12, %v1678_v39, 0.0  ;;  %v252_v43 = vpack.c.bf16 %v1678_v39, %v1674_v19 }
 0x1ae   :  { %249 = vadd.xlane.f32.xlu0 %v248_v42  ;;  %1602 = vmatmul.mubr.msk.bf16.vlgmr.msra.gmra.mxu1 %vm238_vm12, %v251_v41 }
 0x1af   :  { %1606 = vmatpush3.bf16.msra.mxu1 %v1869_v29  ;;  %1607 = vmatprep.mubr.msk.bf16.mxu1 %vm1771_vm0, %v1770_v0 }
 0x1b0   :  { %1619 = vmatprep.subr.bf16.mxu1 %v1770_v0 }
 0x1b6   :  { %1608 = vmatmul.mubr.msk.bf16.vlgmr.msra.gmra.mxu1 %vm238_vm12, %v252_v43 }
 0x1b7   :  { %1621 = vmatprep.mubr.msk.bf16.mxu1 %vm1771_vm0, %v1770_v0 }
 0x204   :  { %v241_v44 = vpop.xlane.xlu0 %240 }
 0x205   :  { %vm342_vm5 = vcmp.eq.f32.partialorder %v241_v44, 0.0 }
 0x206   :  { %v346_v46 = vsel %vm342_vm5, 1.0, %v241_v44 }
 0x207   :  { %1679 = vrcp.f32 %v346_v46  ;;  %v1535_v46 = vld [vmem:[%s2319_s2 + $0x30] sm:$0xff] }
 0x208   :  { %v247_v47 = vpop.xlane.xlu0 %246 }
 0x209   :  { %vm344_vm7 = vcmp.eq.f32.partialorder %v247_v47, 0.0 }
 0x20a   :  { %v348_v49 = vsel %vm344_vm7, 1.0, %v247_v47  ;;  %v1536_v47 = vld [vmem:[%s2319_s2 + $0x38] sm:$0xff] }
 0x214   :  { %v1680_v53 = vpop.eup %1679 }
 0x236   :  { %v244_v45 = vpop.xlane.xlu1 %243 }
 0x237   :  { %vm343_vm6 = vcmp.eq.f32.partialorder %v244_v45, 0.0  ;;  %v250_v48 = vpop.xlane.xlu0 %249 }
 0x238   :  { %v347_v29 = vsel %vm343_vm6, 1.0, %v244_v45  ;;  %vm345_vm8 = vcmp.eq.f32.partialorder %v250_v48, 0.0 }
 0x239   :  { %1681 = vrcp.f32 %v347_v29  ;;  %v349_v52 = vsel %vm345_vm8, 1.0, %v250_v48  ;;  %v497_v29 = vpack.c.bf16 %v1536_v47, %v1535_v46  ;;  %v1533_v48 = vld [vmem:[%s2319_s2 + $0x20] sm:$0xff] }
 0x23a   :  { %1683 = vrcp.f32 %v348_v49  ;;  %v1534_v49 = vld [vmem:[%s2319_s2 + $0x28] sm:$0xff] }
 0x23b   :  { %1685 = vrcp.f32 %v349_v52  ;;  %1611 = vmatprep.subr.bf16.mxu0 %v497_v29  ;;  %v496_v52 = vpack.c.bf16 %v1534_v49, %v1533_v48 }
 0x23c   :  { %1612 = vmatpush3.bf16.msra.mxu0 %v497_v29 }
 0x23d   :  { %1613 = vmatprep.subr.bf16.mxu0 %v496_v52 }
 0x240   :  { %1614 = vmatpush3.bf16.msra.mxu0 %v496_v52 }
 0x241   :  { %1625 = vmatprep.subr.bf16.mxu0 %v1770_v0 }
 0x246   :  { %v1682_v58 = vpop.eup %1681 }
 0x247   :  { %v1684_v1 = vpop.eup %1683 }
 0x248   :  { %v1686_v9 = vpop.eup %1685 }
 0x26e   :  { %v291_v54 = vpop.f32.mrf.mxu1 }
 0x26f   :  { %v354_v55 = vmul.f32 %v1680_v53, %v291_v54 }
 0x270   :  { %v1603_v56 = vpop.f32.mrf.mxu1 }
 0x271   :  { %v366_v57 = vsel %vm342_vm5, %v1859_v20, %v354_v55 }
 0x272   :  { %v294_v59 = vpop.f32.mrf.mxu1  ;;  %v370_v60 = vsel %vm118_vm1, %v366_v57, 0.0 }
 0x273   :  { %v355_v61 = vmul.f32 %v1682_v58, %v294_v59  ;;  %371 = vadd.xlane.f32.xlu0 %v370_v60 }
 0x274   :  { %v1604_v62 = vpop.f32.mrf.mxu1 }
 0x275   :  { %v367_v63 = vsel %vm343_vm6, %v1863_v25, %v355_v61 }
 0x276   :  { %v335_v2 = vpop.f32.mrf.mxu1  ;;  %v373_v3 = vsel %vm118_vm1, %v367_v63, 0.0 }
 0x277   :  { %v356_v4 = vmul.f32 %v1684_v1, %v335_v2  ;;  %374 = vadd.xlane.f32.xlu1 %v373_v3 }
 0x278   :  { %v1609_v6 = vpop.f32.mrf.mxu1 }
 0x279   :  { %v368_v8 = vsel %vm344_vm7, %v1859_v20, %v356_v4 }
 0x27a   :  { %v338_v10 = vpop.f32.mrf.mxu1  ;;  %v376_v16 = vsel %vm118_vm1, %v368_v8, 0.0 }
 0x27b   :  { %v357_v17 = vmul.f32 %v1686_v9, %v338_v10  ;;  %377 = vadd.xlane.f32.xlu0 %v376_v16 }
 0x27c   :  { %v1610_v18 = vpop.f32.mrf.mxu1 }
 0x27d   :  { %v369_v19 = vsel %vm345_vm8, %v1863_v25, %v357_v17 }
 0x27e   :  { %v379_v21 = vsel %vm118_vm1, %v369_v19, 0.0 }
 0x27f   :  { %380 = vadd.xlane.f32.xlu1 %v379_v21  ;;  %v2004_v21 = vsub.s32 3, %v1837_v11 }
 0x2fc   :  { %v372_v22 = vpop.xlane.xlu0 %371 }
 0x2fd   :  { %v383_v23 = vmul.f32 0.03125, %v372_v22 }
 0x2ff   :  { %v1970_v24 = vsub.f32 %v366_v57, %v383_v23 }
 0x300   :  { %v375_v26 = vpop.xlane.xlu1 %374 }
 0x301   :  { %v384_v27 = vmul.f32 0.03125, %v375_v26  ;;  %v391_v20 = vmul.f32 %v1970_v24, %v1970_v24 }
 0x303   :  { %v1974_v28 = vsub.f32 %v367_v63, %v384_v27  ;;  %v395_v32 = vsel %vm118_vm1, %v391_v20, 0.0 }
 0x304   :  { %396 = vadd.xlane.f32.xlu0 %v395_v32  ;;  %v378_v33 = vpop.xlane.xlu0 %377  ;;  %v2007_v32 = vsub.s32 4, %v1837_v11 }
 0x305   :  { %v385_v36 = vmul.f32 0.03125, %v378_v33  ;;  %v392_v25 = vmul.f32 %v1974_v28, %v1974_v28 }
 0x307   :  { %v1979_v37 = vsub.f32 %v368_v8, %v385_v36  ;;  %v398_v38 = vsel %vm118_vm1, %v392_v25, 0.0  ;;  %v450_v36 = vrot.slane %v1845_v13, %v2004_v21 }
 0x308   :  { %399 = vadd.xlane.f32.xlu1 %v398_v38  ;;  %v381_v39 = vpop.xlane.xlu1 %380 }
 0x309   :  { %v386_v40 = vmul.f32 0.03125, %v381_v39  ;;  %v393_v41 = vmul.f32 %v1979_v37, %v1979_v37  ;;  %v453_v49 = vmul.f32 %v450_v36, %v1979_v37 }
 0x30b   :  { %v1984_v42 = vsub.f32 %v369_v19, %v386_v40  ;;  %v401_v43 = vsel %vm118_vm1, %v393_v41, 0.0  ;;  %v462_v40 = vrot.slane %v1845_v13, %v2007_v32  ;;  %v451_v41 = vmul.f32 %v450_v36, %v1970_v24 }
 0x30c   :  { %402 = vadd.xlane.f32.xlu0 %v401_v43 }
 0x30d   :  { %v394_v44 = vmul.f32 %v1984_v42, %v1984_v42  ;;  %v454_v13 = vmul.f32 %v450_v36, %v1984_v42 }
 0x30f   :  { %v404_v45 = vsel %vm118_vm1, %v394_v44, 0.0 }
 0x310   :  { %405 = vadd.xlane.f32.xlu1 %v404_v45  ;;  %v452_v45 = vmul.f32 %v450_v36, %v1974_v28 }
 0x38d   :  { %v397_v53 = vpop.xlane.xlu0 %396 }
 0x38e   :  { %v407_v54 = vmul.f32 0.032258064, %v397_v53 }
 0x390   :  { %1687 = vrsqrt.f32 %v407_v54  ;;  %vm413_vm9 = vcmp.eq.f32.partialorder %v407_v54, inf  ;;  %v416_v63 = vand.u32 2147483648, %v407_v54  ;;  %vm415_vm13 = vcmp.eq.f32.partialorder %v407_v54, 0.0 }
 0x391   :  { %v400_v55 = vpop.xlane.xlu1 %399 }
 0x392   :  { %v408_v56 = vmul.f32 0.032258064, %v400_v55 }
 0x394   :  { %1689 = vrsqrt.f32 %v408_v56  ;;  %vm420_vm14 = vcmp.eq.f32.partialorder %v408_v56, inf  ;;  %v423_v8 = vand.u32 2147483648, %v408_v56  ;;  %vm422_vm15 = vcmp.eq.f32.partialorder %v408_v56, 0.0 }
 0x395   :  { %v403_v57 = vpop.xlane.xlu0 %402 }
 0x396   :  { %v409_v58 = vmul.f32 0.032258064, %v403_v57 }
 0x398   :  { %1691 = vrsqrt.f32 %v409_v58  ;;  %vm427_vm5 = vcmp.eq.f32.partialorder %v409_v58, inf  ;;  %v430_v19 = vand.u32 2147483648, %v409_v58  ;;  %vm429_vm6 = vcmp.eq.f32.partialorder %v409_v58, 0.0 }
 0x399   :  { %v406_v59 = vpop.xlane.xlu1 %405 }
 0x39a   :  { %v410_v60 = vmul.f32 0.032258064, %v406_v59 }
 0x39c   :  { %1693 = vrsqrt.f32 %v410_v60  ;;  %vm434_vm7 = vcmp.eq.f32.partialorder %v410_v60, inf  ;;  %v437_v33 = vand.u32 2147483648, %v410_v60  ;;  %vm436_vm8 = vcmp.eq.f32.partialorder %v410_v60, 0.0 }
 0x39d   :  { %v1688_v61 = vpop.eup %1687 }
 0x39e   :  { %v412_v62 = vmul.f32 %v1688_v61, %v407_v54 }
 0x3a0   :  { %v414_v1 = vsel %vm413_vm9, %v407_v54, %v412_v62 }
 0x3a1   :  { %v1690_v2 = vpop.eup %1689  ;;  %v417_v3 = vsel %vm415_vm13, %v416_v63, %v414_v1 }
 0x3a2   :  { %v439_v4 = vadd.f32 1e-06, %v417_v3  ;;  %v419_v6 = vmul.f32 %v1690_v2, %v408_v56 }
 0x3a4   :  { %1695 = vrcp.f32 %v439_v4  ;;  %v421_v9 = vsel %vm420_vm14, %v408_v56, %v419_v6 }
 0x3a5   :  { %v1692_v10 = vpop.eup %1691  ;;  %v424_v16 = vsel %vm422_vm15, %v423_v8, %v421_v9 }
 0x3a6   :  { %v440_v17 = vadd.f32 1e-06, %v424_v16  ;;  %v426_v18 = vmul.f32 %v1692_v10, %v409_v58  ;;  %v2024_v16 = vld [vmem:[%s2321_s3 + $0x8] sm:$0x1f] }
 0x3a8   :  { %1697 = vrcp.f32 %v440_v17  ;;  %v428_v22 = vsel %vm427_vm5, %v409_v58, %v426_v18  ;;  %v501_v17 = vrot.slane %v2024_v16, %v1840_v12  ;;  %v580_v18 = vrot.slane %v2024_v16, %v1848_v14 }
 0x3a9   :  { %v1694_v23 = vpop.eup %1693  ;;  %v431_v26 = vsel %vm429_vm6, %v430_v19, %v428_v22 }
 0x3aa   :  { %v441_v27 = vadd.f32 1e-06, %v431_v26  ;;  %v433_v20 = vmul.f32 %v1694_v23, %v410_v60 }
 0x3ac   :  { %1699 = vrcp.f32 %v441_v27  ;;  %v435_v25 = vsel %vm434_vm7, %v410_v60, %v433_v20 }
 0x3ad   :  { %v438_v38 = vsel %vm436_vm8, %v437_v33, %v435_v25 }
 0x3ae   :  { %v442_v39 = vadd.f32 1e-06, %v438_v38 }
 0x3b0   :  { %1701 = vrcp.f32 %v442_v39  ;;  %v560_v39 = vrot.slane %v2024_v16, %v1851_v15 }
 0x3b1   :  { %v1696_v43 = vpop.eup %1695 }
 0x3b2   :  { %v455_v44 = vmul.f32 %v1696_v43, %v451_v41 }
 0x3b4   :  { %v463_v46 = vadd.f32 %v462_v40, %v455_v44 }
 0x3b5   :  { %v1698_v47 = vpop.eup %1697 }
 0x3b6   :  { %v456_v29 = vmul.f32 %v1698_v47, %v452_v45  ;;  %v471_v48 = vmul.f32 1.442695, %v463_v46  ;;  %vm467_vm9 = vcmp.gt.f32.partialorder %v463_v46, 0.0 }
 0x3b8   :  { %v464_v52 = vadd.f32 %v462_v40, %v456_v29  ;;  %1703 = vpow2.f32 %v471_v48 }
 0x3b9   :  { %v1700_v53 = vpop.eup %1699 }
 0x3ba   :  { %v473_v54 = vmul.f32 1.442695, %v464_v52  ;;  %v457_v55 = vmul.f32 %v1700_v53, %v453_v49  ;;  %vm468_vm13 = vcmp.gt.f32.partialorder %v464_v52, 0.0 }
 0x3bc   :  { %1705 = vpow2.f32 %v473_v54  ;;  %v465_v24 = vadd.f32 %v462_v40, %v457_v55 }
 0x3bd   :  { %v1702_v56 = vpop.eup %1701 }
 0x3be   :  { %v458_v57 = vmul.f32 %v1702_v56, %v454_v13  ;;  %v475_v58 = vmul.f32 1.442695, %v465_v24  ;;  %vm469_vm14 = vcmp.gt.f32.partialorder %v465_v24, 0.0 }
 0x3c0   :  { %v466_v59 = vadd.f32 %v462_v40, %v458_v57  ;;  %1707 = vpow2.f32 %v475_v58 }
 0x3c2   :  { %v477_v28 = vmul.f32 1.442695, %v466_v59  ;;  %vm470_vm15 = vcmp.gt.f32.partialorder %v466_v59, 0.0 }
 0x3c4   :  { %1709 = vpow2.f32 %v477_v28 }
 0x3c5   :  { %v1704_v60 = vpop.eup %1703 }
 0x3c6   :  { %v1528_v61 = vadd.f32 -1.0, %v1704_v60 }
 0x3c8   :  { %v483_v63 = vsel %vm467_vm9, %v463_v46, %v1528_v61 }
 0x3c9   :  { %v1706_v62 = vpop.eup %1705 }
 0x3ca   :  { %v1529_v37 = vadd.f32 -1.0, %v1706_v62 }
 0x3cc   :  { %v484_v1 = vsel %vm468_vm13, %v464_v52, %v1529_v37 }
 0x3cd   :  { %v1708_v2 = vpop.eup %1707  ;;  %v494_v3 = vpack.c.bf16 %v484_v1, %v483_v63 }
 0x3ce   :  { %v1530_v42 = vadd.f32 -1.0, %v1708_v2 }
 0x3cf   :  { %1615 = vmatprep.mubr.msk.bf16.mxu0 %vm118_vm1, %v494_v3 }
 0x3d0   :  { %v485_v8 = vsel %vm469_vm14, %v465_v24, %v1530_v42 }
 0x3d1   :  { %v1710_v4 = vpop.eup %1709 }
 0x3d2   :  { %v1531_v6 = vadd.f32 -1.0, %v1710_v4 }
 0x3d4   :  { %v486_v9 = vsel %vm470_vm15, %v466_v59, %v1531_v6 }
 0x3d5   :  { %v495_v10 = vpack.c.bf16 %v486_v9, %v485_v8 }
 0x3d7   :  { %1616 = vmatmul.mubr.msk.bf16.vlgmr.msra.gmra.mxu0 %vm118_vm1, %v495_v10 }
 0x3d8   :  { %1627 = vmatprep.mubr.msk.bf16.mxu0 %vm1771_vm0, %v1770_v0 }
 0x497   :  { %v1617_v19 = vpop.f32.mrf.mxu0 }
 0x498   :  { %v2030_v22 = vadd.f32 %v1617_v19, %v501_v17 }
 0x499   :  { %v542_v23 = vpop.f32.mrf.mxu0 }
 0x49a   :  { %v2032_v26 = vadd.f32 %v542_v23, %v501_v17  ;;  %v583_v27 = vmul.f32 %v580_v18, %v2030_v22  ;;  %v563_v53 = vmul.f32 %v560_v39, %v2030_v22 }
 0x49b   :  { %v1618_v20 = vpop.f32.mrf.mxu0 }
 0x49c   :  { %v2035_v33 = vadd.f32 %v1618_v20, %v501_v17  ;;  %v591_v36 = vsel %vm118_vm1, %v583_v27, 0.0  ;;  %v581_v25 = vmul.f32 %v580_v18, %v2032_v26  ;;  %v561_v44 = vmul.f32 %v560_v39, %v2032_v26 }
 0x49d   :  { %592 = vadd.xlane.f32.xlu0 %v591_v36  ;;  %v545_v38 = vpop.f32.mrf.mxu0  ;;  %v571_v55 = vsel %vm118_vm1, %v563_v53, 0.0 }
 0x49e   :  { %v2041_v40 = vadd.f32 %v545_v38, %v501_v17  ;;  %v680_v41 = vpack.c.bf16 %v2035_v33, %v2030_v22  ;;  %v584_v43 = vmul.f32 %v580_v18, %v2035_v33  ;;  %v585_v46 = vsel %vm118_vm1, %v581_v25, 0.0 }
 0x49f   :  { %v565_v49 = vsel %vm118_vm1, %v561_v44, 0.0  ;;  %v564_v13 = vmul.f32 %v560_v39, %v2035_v33 }
 0x4a0   :  { %1626 = vmatpush3.bf16.msra.mxu0 %v680_v41  ;;  %v594_v45 = vsel %vm118_vm1, %v584_v43, 0.0  ;;  %v679_v47 = vpack.c.bf16 %v2041_v40, %v2032_v26  ;;  %v582_v29 = vmul.f32 %v580_v18, %v2041_v40  ;;  %v562_v52 = vmul.f32 %v560_v39, %v2041_v40 }
 0x4a1   :  { %595 = vadd.xlane.f32.xlu1 %v594_v45  ;;  %586 = vadd.xlane.f32.xlu0 %v585_v46  ;;  %v574_v24 = vsel %vm118_vm1, %v564_v13, 0.0 }
 0x4a2   :  { %1620 = vmatpush3.bf16.msra.mxu1 %v679_v47  ;;  %v588_v48 = vsel %vm118_vm1, %v582_v29, 0.0  ;;  %v568_v54 = vsel %vm118_vm1, %v562_v52, 0.0 }
 0x4a5   :  { %589 = vadd.xlane.f32.xlu1 %v588_v48  ;;  %566 = vadd.xlane.f32.xlu0 %v565_v49 }
 0x4a9   :  { %569 = vadd.xlane.f32.xlu1 %v568_v54  ;;  %572 = vadd.xlane.f32.xlu0 %v571_v55 }
 0x4ad   :  { %575 = vadd.xlane.f32.xlu1 %v574_v24 }
 0x526   :  { %v593_v56 = vpop.xlane.xlu0 %592 }
 0x527   :  { %v613_v37 = vrot.slane %v593_v56, %v1892_v50 }
 0x52a   :  { %v596_v57 = vpop.xlane.xlu1 %595  ;;  %v587_v58 = vpop.xlane.xlu0 %586 }
 0x52b   :  { %v617_v59 = vrot.slane %v596_v57, %v1895_v51  ;;  %v604_v61 = vrot.slane %v587_v58, %v1892_v50 }
 0x52d   :  { %v618_v3 = vsel %vm200_vm4, %v617_v59, %v613_v37 }
 0x52e   :  { %v590_v28 = vpop.xlane.xlu1 %589  ;;  %v567_v60 = vpop.xlane.xlu0 %566 }
 0x52f   :  { %v608_v62 = vrot.slane %v590_v28, %v1895_v51 }
 0x531   :  { %v609_v63 = vsel %vm200_vm4, %v608_v62, %v604_v61 }
 0x532   :  { %v633_v1 = vadd.f32 %v609_v63, %v567_v60  ;;  %v570_v2 = vpop.xlane.xlu1 %569  ;;  %v573_v42 = vpop.xlane.xlu0 %572 }
 0x533   :  { %v634_v4 = vadd.f32 %v609_v63, %v570_v2  ;;  %v635_v6 = vadd.f32 %v618_v3, %v573_v42 }
 0x534   :  { %vm637_vm5 = vcmp.gt.f32.partialorder %v633_v1, 0.0  ;;  %v641_v8 = vmul.f32 0.2, %v633_v1 }
 0x535   :  { %vm638_vm6 = vcmp.gt.f32.partialorder %v634_v4, 0.0  ;;  %v642_v9 = vmul.f32 0.2, %v634_v4  ;;  %vm639_vm7 = vcmp.gt.f32.partialorder %v635_v6, 0.0  ;;  %v643_v10 = vmul.f32 0.2, %v635_v6 }
 0x536   :  { %v645_v17 = vsel %vm637_vm5, %v633_v1, %v641_v8  ;;  %v576_v18 = vpop.xlane.xlu1 %575 }
 0x537   :  { %v649_v19 = vmul.f32 0.17677669, %v645_v17  ;;  %v646_v23 = vsel %vm638_vm6, %v634_v4, %v642_v9  ;;  %v647_v27 = vsel %vm639_vm7, %v635_v6, %v643_v10  ;;  %v636_v20 = vadd.f32 %v618_v3, %v576_v18 }
 0x538   :  { %v650_v36 = vmul.f32 0.17677669, %v646_v23  ;;  %v651_v25 = vmul.f32 0.17677669, %v647_v27 }
 0x539   :  { %v653_v38 = vsel %vm1912_vm10, %v649_v19, -1e+30  ;;  %vm640_vm8 = vcmp.gt.f32.partialorder %v636_v20, 0.0  ;;  %v644_v39 = vmul.f32 0.2, %v636_v20 }
 0x53a   :  { %v657_v41 = vmul.f32 1.442695, %v653_v38  ;;  %v654_v43 = vsel %vm1936_vm3, %v650_v36, -1e+30  ;;  %v655_v44 = vsel %vm1918_vm11, %v651_v25, -1e+30 }
 0x53b   :  { %v659_v45 = vmul.f32 1.442695, %v654_v43  ;;  %v661_v46 = vmul.f32 1.442695, %v655_v44  ;;  %v648_v47 = vsel %vm640_vm8, %v636_v20, %v644_v39 }
 0x53c   :  { %1711 = vpow2.f32 %v657_v41  ;;  %v652_v29 = vmul.f32 0.17677669, %v648_v47 }
 0x53d   :  { %1713 = vpow2.f32 %v659_v45 }
 0x53e   :  { %1715 = vpow2.f32 %v661_v46  ;;  %v656_v5 = vsel %vm1930_vm2, %v652_v29, -1e+30 }
 0x53f   :  { %v663_v48 = vmul.f32 1.442695, %v656_v5 }
 0x541   :  { %1717 = vpow2.f32 %v663_v48 }
 0x549   :  { %v1712_v49 = vpop.eup %1711 }
 0x54a   :  { %v1714_v52 = vpop.eup %1713  ;;  %v665_v31 = vsel %vm238_vm12, %v1712_v49, 0.0 }
 0x54b   :  { %v1716_v53 = vpop.eup %1715  ;;  %666 = vadd.xlane.f32.xlu0 %v665_v31  ;;  %v668_v7 = vsel %vm238_vm12, %v1714_v52, 0.0  ;;  %v677_v54 = vpack.c.bf16 %v1714_v52, %v1712_v49 }
 0x54c   :  { %669 = vadd.xlane.f32.xlu1 %v668_v7  ;;  %v671_v13 = vsel %vm238_vm12, %v1716_v53, 0.0 }
 0x54d   :  { %1622 = vmatmul.mubr.msk.bf16.vlgmr.msra.gmra.mxu1 %vm238_vm12, %v677_v54 }
 0x54e   :  { %v1718_v55 = vpop.eup %1717 }
 0x54f   :  { %672 = vadd.xlane.f32.xlu0 %v671_v13  ;;  %v674_v30 = vsel %vm238_vm12, %v1718_v55, 0.0  ;;  %v678_v24 = vpack.c.bf16 %v1718_v55, %v1716_v53 }
 0x550   :  { %675 = vadd.xlane.f32.xlu1 %v674_v30 }
 0x551   :  { %1628 = vmatmul.mubr.msk.bf16.vlgmr.msra.gmra.mxu0 %vm238_vm12, %v678_v24 }
 0x5d4   :  { %v667_v56 = vpop.xlane.xlu0 %666 }
 0x5d5   :  { %v670_v57 = vpop.xlane.xlu1 %669  ;;  %vm769_vm10 = vcmp.eq.f32.partialorder %v667_v56, 0.0 }
 0x5d6   :  { %v773_v59 = vsel %vm769_vm10, 1.0, %v667_v56  ;;  %vm770_vm11 = vcmp.eq.f32.partialorder %v670_v57, 0.0  ;;  %v915_v56 = vld [vmem:[%s2323_s4 + $0x10] sm:$0xff] }
 0x5d7   :  { %1719 = vrcp.f32 %v773_v59  ;;  %v774_v60 = vsel %vm770_vm11, 1.0, %v670_v57  ;;  %v916_v57 = vld [vmem:[%s2323_s4 + $0x18] sm:$0xff] }
 0x5d8   :  { %v673_v58 = vpop.xlane.xlu0 %672  ;;  %1721 = vrcp.f32 %v774_v60  ;;  %v921_v59 = vpack.c.bf16 %v916_v57, %v915_v56 }
 0x5d9   :  { %vm771_vm2 = vcmp.eq.f32.partialorder %v673_v58, 0.0  ;;  %v676_v28 = vpop.xlane.xlu1 %675 }
 0x5da   :  { %v775_v61 = vsel %vm771_vm2, 1.0, %v673_v58  ;;  %vm772_vm3 = vcmp.eq.f32.partialorder %v676_v28, 0.0  ;;  %v913_v58 = vld [vmem:[%s2323_s4] sm:$0xff]  ;;  %1631 = vmatprep.subr.bf16.mxu1 %v921_v59 }
 0x5db   :  { %1723 = vrcp.f32 %v775_v61  ;;  %v776_v62 = vsel %vm772_vm3, 1.0, %v676_v28  ;;  %v914_v28 = vld [vmem:[%s2323_s4 + $0x8] sm:$0xff]  ;;  %1632 = vmatpush3.bf16.msra.mxu1 %v921_v59 }
 0x5dc   :  { %1725 = vrcp.f32 %v776_v62  ;;  %v920_v60 = vpack.c.bf16 %v914_v28, %v913_v58 }
 0x5de   :  { %1633 = vmatprep.subr.bf16.mxu1 %v920_v60 }
 0x5df   :  { %1634 = vmatpush3.bf16.msra.mxu1 %v920_v60 }
 0x5e0   :  { %1647 = vmatprep.subr.bf16.mxu1 %v1770_v0 }
 0x5e4   :  { %v1720_v37 = vpop.eup %1719 }
 0x5e5   :  { %v1722_v3 = vpop.eup %1721 }
 0x5e8   :  { %v1724_v4 = vpop.eup %1723 }
 0x5e9   :  { %v1726_v20 = vpop.eup %1725 }
 0x60d   :  { %v718_v63 = vpop.f32.mrf.mxu1 }
 0x60e   :  { %v781_v1 = vmul.f32 %v1720_v37, %v718_v63 }
 0x60f   :  { %v1623_v2 = vpop.f32.mrf.mxu1 }
 0x610   :  { %v793_v42 = vsel %vm769_vm10, %v2032_v26, %v781_v1 }
 0x611   :  { %v721_v6 = vpop.f32.mrf.mxu1  ;;  %v762_v8 = vpop.f32.mrf.mxu0  ;;  %v797_v9 = vsel %vm118_vm1, %v793_v42, 0.0 }
 0x612   :  { %v782_v10 = vmul.f32 %v1722_v3, %v721_v6  ;;  %v783_v17 = vmul.f32 %v1724_v4, %v762_v8  ;;  %798 = vadd.xlane.f32.xlu0 %v797_v9 }
 0x613   :  { %v1624_v18 = vpop.f32.mrf.mxu1  ;;  %v1629_v19 = vpop.f32.mrf.mxu0 }
 0x614   :  { %v794_v23 = vsel %vm770_vm11, %v2041_v40, %v782_v10  ;;  %v795_v27 = vsel %vm771_vm2, %v2030_v22, %v783_v17 }
 0x615   :  { %v765_v36 = vpop.f32.mrf.mxu0  ;;  %v800_v26 = vsel %vm118_vm1, %v794_v23, 0.0  ;;  %v803_v25 = vsel %vm118_vm1, %v795_v27, 0.0 }
 0x616   :  { %v784_v38 = vmul.f32 %v1726_v20, %v765_v36  ;;  %801 = vadd.xlane.f32.xlu1 %v800_v26  ;;  %804 = vadd.xlane.f32.xlu0 %v803_v25 }
 0x617   :  { %v1630_v39 = vpop.f32.mrf.mxu0 }
 0x618   :  { %v796_v41 = vsel %vm772_vm3, %v2035_v33, %v784_v38 }
 0x619   :  { %v806_v43 = vsel %vm118_vm1, %v796_v41, 0.0 }
 0x61a   :  { %807 = vadd.xlane.f32.xlu1 %v806_v43 }
 0x69b   :  { %v799_v40 = vpop.xlane.xlu0 %798 }
 0x69c   :  { %v809_v44 = vmul.f32 0.03125, %v799_v40 }
 0x69e   :  { %v2096_v45 = vsub.f32 %v793_v42, %v809_v44 }
 0x69f   :  { %v802_v22 = vpop.xlane.xlu1 %801  ;;  %v805_v46 = vpop.xlane.xlu0 %804 }
 0x6a0   :  { %v810_v47 = vmul.f32 0.03125, %v802_v22  ;;  %v811_v29 = vmul.f32 0.03125, %v805_v46  ;;  %v817_v5 = vmul.f32 %v2096_v45, %v2096_v45 }
 0x6a2   :  { %v2100_v48 = vsub.f32 %v794_v23, %v810_v47  ;;  %v2102_v49 = vsub.f32 %v795_v27, %v811_v29  ;;  %v821_v33 = vsel %vm118_vm1, %v817_v5, 0.0  ;;  %v876_v5 = vrot.slane %v2024_v16, %v2004_v21 }
 0x6a3   :  { %v808_v52 = vpop.xlane.xlu1 %807  ;;  %822 = vadd.xlane.f32.xlu0 %v821_v33  ;;  %v888_v33 = vrot.slane %v2024_v16, %v2007_v32 }
 0x6a4   :  { %v812_v31 = vmul.f32 0.03125, %v808_v52  ;;  %v818_v53 = vmul.f32 %v2100_v48, %v2100_v48  ;;  %v819_v7 = vmul.f32 %v2102_v49, %v2102_v49  ;;  %v877_v52 = vmul.f32 %v876_v5, %v2096_v45 }
 0x6a6   :  { %v2109_v54 = vsub.f32 %v796_v41, %v812_v31  ;;  %v824_v55 = vsel %vm118_vm1, %v818_v53, 0.0  ;;  %v827_v13 = vsel %vm118_vm1, %v819_v7, 0.0  ;;  %v878_v7 = vmul.f32 %v876_v5, %v2100_v48 }
 0x6a7   :  { %825 = vadd.xlane.f32.xlu1 %v824_v55  ;;  %828 = vadd.xlane.f32.xlu0 %v827_v13 }
 0x6a8   :  { %v820_v30 = vmul.f32 %v2109_v54, %v2109_v54  ;;  %v880_v59 = vmul.f32 %v876_v5, %v2109_v54 }
 0x6aa   :  { %v830_v24 = vsel %vm118_vm1, %v820_v30, 0.0  ;;  %v879_v30 = vmul.f32 %v876_v5, %v2102_v49  ;;  %v2176_v5 = vld [vmem:[%s2321_s3 + $0x10] sm:$0x1f] }
 0x6ab   :  { %831 = vadd.xlane.f32.xlu1 %v830_v24 }
 0x72c   :  { %v823_v61 = vpop.xlane.xlu0 %822 }
 0x72d   :  { %v833_v62 = vmul.f32 0.032258064, %v823_v61 }
 0x72f   :  { %1727 = vrsqrt.f32 %v833_v62  ;;  %vm839_vm12 = vcmp.eq.f32.partialorder %v833_v62, inf  ;;  %v842_v8 = vand.u32 2147483648, %v833_v62  ;;  %vm841_vm9 = vcmp.eq.f32.partialorder %v833_v62, 0.0 }
 0x730   :  { %v826_v37 = vpop.xlane.xlu1 %825  ;;  %v829_v1 = vpop.xlane.xlu0 %828 }
 0x731   :  { %v834_v63 = vmul.f32 0.032258064, %v826_v37  ;;  %v835_v2 = vmul.f32 0.032258064, %v829_v1 }
 0x733   :  { %1729 = vrsqrt.f32 %v834_v63  ;;  %vm846_vm13 = vcmp.eq.f32.partialorder %v834_v63, inf  ;;  %vm848_vm14 = vcmp.eq.f32.partialorder %v834_v63, 0.0  ;;  %v849_v27 = vand.u32 2147483648, %v834_v63 }
 0x734   :  { %1731 = vrsqrt.f32 %v835_v2  ;;  %v832_v3 = vpop.xlane.xlu1 %831  ;;  %vm853_vm15 = vcmp.eq.f32.partialorder %v835_v2, inf  ;;  %v856_v26 = vand.u32 2147483648, %v835_v2  ;;  %vm855_vm5 = vcmp.eq.f32.partialorder %v835_v2, 0.0 }
 0x735   :  { %v836_v42 = vmul.f32 0.032258064, %v832_v3 }
 0x737   :  { %1733 = vrsqrt.f32 %v836_v42  ;;  %vm860_vm6 = vcmp.eq.f32.partialorder %v836_v42, inf  ;;  %v863_v22 = vand.u32 2147483648, %v836_v42  ;;  %vm862_vm7 = vcmp.eq.f32.partialorder %v836_v42, 0.0 }
 0x73c   :  { %v1728_v4 = vpop.eup %1727 }
 0x73d   :  { %v838_v6 = vmul.f32 %v1728_v4, %v833_v62 }
 0x73f   :  { %v840_v9 = vsel %vm839_vm12, %v833_v62, %v838_v6 }
 0x740   :  { %v1730_v10 = vpop.eup %1729  ;;  %v843_v17 = vsel %vm841_vm9, %v842_v8, %v840_v9 }
 0x741   :  { %v1732_v18 = vpop.eup %1731  ;;  %v865_v19 = vadd.f32 1e-06, %v843_v17  ;;  %v845_v23 = vmul.f32 %v1730_v10, %v834_v63 }
 0x742   :  { %v852_v20 = vmul.f32 %v1732_v18, %v835_v2 }
 0x743   :  { %1735 = vrcp.f32 %v865_v19  ;;  %v847_v36 = vsel %vm846_vm13, %v834_v63, %v845_v23  ;;  %v1555_v19 = vld [vmem:[%s2319_s2 + $0x50] sm:$0xff]  ;;  %v1556_v23 = vld [vmem:[%s2319_s2 + $0x58] sm:$0xff]  ;;  %vm202_vm13 = vcmask 1041409  }
 0x744   :  { %v1734_v25 = vpop.eup %1733  ;;  %v850_v38 = vsel %vm848_vm14, %v849_v27, %v847_v36  ;;  %v854_v39 = vsel %vm853_vm15, %v835_v2, %v852_v20  ;;  %v1135_v27 = vpack.c.bf16 %v1556_v23, %v1555_v19  ;;  %v1553_v20 = vld [vmem:[%s2319_s2 + $0x40] sm:$0xff]  ;;  %v1554_v36 = vld [vmem:[%s2319_s2 + $0x48] sm:$0xff]  ;;  %vm1049_vm15 = vcmask 123904  }
 0x745   :  { %v866_v41 = vadd.f32 1e-06, %v850_v38  ;;  %v857_v43 = vsel %vm855_vm5, %v856_v26, %v854_v39  ;;  %v859_v40 = vmul.f32 %v1734_v25, %v836_v42  ;;  %v1134_v26 = vpack.c.bf16 %v1554_v36, %v1553_v20 }
 0x746   :  { %v867_v44 = vadd.f32 1e-06, %v857_v43  ;;  %1639 = vmatprep.subr.bf16.mxu0 %v1135_v27  ;;  %vm1342_vm5 = vcmask 254976  }
 0x747   :  { %1737 = vrcp.f32 %v866_v41  ;;  %v861_v46 = vsel %vm860_vm6, %v836_v42, %v859_v40  ;;  %1640 = vmatpush3.bf16.msra.mxu0 %v1135_v27  ;;  %v1545_v41 = vld [vmem:[%s2323_s4 + $0x20] ss:$0 sm:$0xff] }
 0x748   :  { %1739 = vrcp.f32 %v867_v44  ;;  %v864_v47 = vsel %vm862_vm7, %v863_v22, %v861_v46  ;;  %1641 = vmatprep.subr.bf16.mxu0 %v1134_v26 }
 0x749   :  { %v868_v29 = vadd.f32 1e-06, %v864_v47 }
 0x74b   :  { %1741 = vrcp.f32 %v868_v29  ;;  %1642 = vmatpush3.bf16.msra.mxu0 %v1134_v26 }
 0x74c   :  { %1655 = vmatprep.subr.bf16.mxu0 %v1770_v0 }
 0x750   :  { %v1736_v31 = vpop.eup %1735 }
 0x751   :  { %v881_v53 = vmul.f32 %v1736_v31, %v877_v52  ;;  %v1139_v52 = vrot.slane %v2176_v5, %v1840_v12 }
 0x753   :  { %v889_v55 = vadd.f32 %v888_v33, %v881_v53 }
 0x754   :  { %v1738_v13 = vpop.eup %1737 }
 0x755   :  { %v1740_v24 = vpop.eup %1739  ;;  %v882_v56 = vmul.f32 %v1738_v13, %v878_v7  ;;  %v897_v57 = vmul.f32 1.442695, %v889_v55  ;;  %vm893_vm8 = vcmp.gt.f32.partialorder %v889_v55, 0.0  ;;  %v1210_v7 = vrot.slane %v2176_v5, %v1848_v14 }
 0x756   :  { %v883_v58 = vmul.f32 %v1740_v24, %v879_v30 }
 0x757   :  { %v890_v28 = vadd.f32 %v888_v33, %v882_v56  ;;  %1743 = vpow2.f32 %v897_v57 }
 0x758   :  { %v1742_v60 = vpop.eup %1741  ;;  %v891_v16 = vadd.f32 %v888_v33, %v883_v58 }
 0x759   :  { %v899_v61 = vmul.f32 1.442695, %v890_v28  ;;  %v884_v45 = vmul.f32 %v1742_v60, %v880_v59  ;;  %vm894_vm10 = vcmp.gt.f32.partialorder %v890_v28, 0.0 }
 0x75a   :  { %v901_v62 = vmul.f32 1.442695, %v891_v16  ;;  %vm895_vm11 = vcmp.gt.f32.partialorder %v891_v16, 0.0 }
 0x75b   :  { %1745 = vpow2.f32 %v899_v61  ;;  %v892_v37 = vadd.f32 %v888_v33, %v884_v45 }
 0x75c   :  { %1747 = vpow2.f32 %v901_v62 }
 0x75d   :  { %v903_v48 = vmul.f32 1.442695, %v892_v37  ;;  %vm896_vm2 = vcmp.gt.f32.partialorder %v892_v37, 0.0 }
 0x75f   :  { %1749 = vpow2.f32 %v903_v48 }
 0x764   :  { %v1744_v63 = vpop.eup %1743 }
 0x765   :  { %v1541_v49 = vadd.f32 -1.0, %v1744_v63 }
 0x767   :  { %v909_v54 = vsel %vm893_vm8, %v889_v55, %v1541_v49  ;;  %v1198_v55 = vrot.slane %v2176_v5, %v1851_v15 }
 0x768   :  { %v1746_v1 = vpop.eup %1745 }
 0x769   :  { %v1748_v2 = vpop.eup %1747  ;;  %v1542_v3 = vadd.f32 -1.0, %v1746_v1 }
 0x76a   :  { %v1543_v4 = vadd.f32 -1.0, %v1748_v2 }
 0x76b   :  { %v910_v42 = vsel %vm894_vm10, %v890_v28, %v1542_v3  ;;  %v1229_v3 = vsub.s32 7, %v1837_v11 }
 0x76c   :  { %v1750_v6 = vpop.eup %1749  ;;  %v918_v8 = vpack.c.bf16 %v910_v42, %v909_v54  ;;  %v911_v10 = vsel %vm895_vm11, %v891_v16, %v1543_v4 }
 0x76d   :  { %v1544_v9 = vadd.f32 -1.0, %v1750_v6 }
 0x76e   :  { %1635 = vmatprep.mubr.msk.bf16.mxu1 %vm118_vm1, %v918_v8 }
 0x76f   :  { %v912_v17 = vsel %vm896_vm2, %v892_v37, %v1544_v9 }
 0x770   :  { %v919_v18 = vpack.c.bf16 %v912_v17, %v911_v10 }
 0x772   :  { %1636 = vmatmul.mubr.msk.bf16.vlgmr.msra.gmra.mxu1 %vm118_vm1, %v919_v18 }
 0x773   :  { %1651 = vmatprep.mubr.msk.bf16.mxu1 %vm1771_vm0, %v1770_v0 }
 0x832   :  { %v1637_v25 = vpop.f32.mrf.mxu1 }
 0x833   :  { %v2163_v46 = vadd.f32 %v1637_v25, %v1545_v41 }
 0x834   :  { %v966_v38 = vpop.f32.mrf.mxu1 }
 0x835   :  { %v2159_v44 = vadd.f32 %v1545_v41, %v966_v38 }
 0x836   :  { %v1638_v39 = vpop.f32.mrf.mxu1 }
 0x837   :  { %v2157_v43 = vadd.f32 %v1638_v39, %v1545_v41 }
 0x838   :  { %v969_v40 = vpop.f32.mrf.mxu1 }
 0x839   :  { %v2161_v22 = vadd.f32 %v1545_v41, %v969_v40  ;;  %v1133_v29 = vpack.c.bf16 %v2157_v43, %v2163_v46  ;;  %v1524_v40 = vld [vmem:[%s2322_s1 + $0x2] sm:$0x3] }
 0x83a   :  { %vm1255_vm14 = vcmp.gt.f32.partialorder %v1524_v40, 0.0 }
 0x83b   :  { %v1132_v47 = vpack.c.bf16 %v2161_v22, %v2159_v44 }
 0x83d   :  { %1643 = vmatprep.mubr.msk.bf16.mxu0 %vm118_vm1, %v1132_v47 }
 0x83e   :  { %1644 = vmatmul.mubr.msk.bf16.vlgmr.msra.gmra.mxu0 %vm118_vm1, %v1133_v29 }
 0x83f   :  { %1659 = vmatprep.mubr.msk.bf16.mxu0 %vm1771_vm0, %v1770_v0 }
 0x8fe   :  { %v1645_v33 = vpop.f32.mrf.mxu0 }
 0x8ff   :  { %v2189_v57 = vadd.f32 %v1645_v33, %v1139_v52 }
 0x900   :  { %v1180_v31 = vpop.f32.mrf.mxu0 }
 0x901   :  { %v2180_v53 = vadd.f32 %v1180_v31, %v1139_v52  ;;  %v1213_v62 = vmul.f32 %v1210_v7, %v2189_v57 }
 0x902   :  { %v1646_v13 = vpop.f32.mrf.mxu0 }
 0x903   :  { %v2186_v30 = vadd.f32 %v1646_v13, %v1139_v52  ;;  %v1211_v24 = vmul.f32 %v1210_v7, %v2180_v53  ;;  %v1221_v63 = vsel %vm118_vm1, %v1213_v62, 0.0 }
 0x904   :  { %v1183_v56 = vpop.f32.mrf.mxu0 }
 0x905   :  { %v2191_v58 = vadd.f32 %v1183_v56, %v1139_v52  ;;  %v1215_v59 = vsel %vm118_vm1, %v1211_v24, 0.0  ;;  %v1200_v28 = vmul.f32 %v1198_v55, %v2186_v30  ;;  %v1214_v48 = vmul.f32 %v1210_v7, %v2186_v30 }
 0x906   :  { %1216 = vadd.xlane.f32.xlu0 %v1215_v59 }
 0x907   :  { %v1204_v60 = vsel %vm118_vm1, %v1200_v28, 0.0  ;;  %v1199_v16 = vmul.f32 %v1198_v55, %v2191_v58  ;;  %v1212_v61 = vmul.f32 %v1210_v7, %v2191_v58  ;;  %v1224_v49 = vsel %vm118_vm1, %v1214_v48, 0.0 }
 0x908   :  { %1205 = vadd.xlane.f32.xlu1 %v1204_v60 }
 0x909   :  { %v1201_v45 = vsel %vm118_vm1, %v1199_v16, 0.0  ;;  %v1218_v37 = vsel %vm118_vm1, %v1212_v61, 0.0 }
 0x90a   :  { %1202 = vadd.xlane.f32.xlu0 %v1201_v45 }
 0x90c   :  { %1219 = vadd.xlane.f32.xlu1 %v1218_v37 }
 0x90e   :  { %1222 = vadd.xlane.f32.xlu0 %v1221_v63 }
 0x910   :  { %1225 = vadd.xlane.f32.xlu1 %v1224_v49 }
 0x98f   :  { %v1217_v1 = vpop.xlane.xlu0 %1216 }
 0x991   :  { %v1206_v2 = vpop.xlane.xlu1 %1205 }
 0x992   :  { %v1234_v9 = vrot.slane %v1206_v2, %v1229_v3 }
 0x993   :  { %v1203_v54 = vpop.xlane.xlu0 %1202 }
 0x994   :  { %v1230_v42 = vrot.slane %v1203_v54, %v1229_v3 }
 0x995   :  { %v1220_v4 = vpop.xlane.xlu1 %1219 }
 0x996   :  { %v1235_v6 = vadd.f32 %v1230_v42, %v1217_v1  ;;  %v1236_v8 = vadd.f32 %v1230_v42, %v1220_v4 }
 0x997   :  { %v1223_v10 = vpop.xlane.xlu0 %1222 }
 0x998   :  { %vm1239_vm0 = vcmp.gt.f32.partialorder %v1235_v6, 0.0  ;;  %v1243_v17 = vmul.f32 0.2, %v1235_v6  ;;  %vm1240_vm3 = vcmp.gt.f32.partialorder %v1236_v8, 0.0  ;;  %v1244_v18 = vmul.f32 0.2, %v1236_v8 }
 0x999   :  { %v1237_v19 = vadd.f32 %v1234_v9, %v1223_v10  ;;  %v1226_v23 = vpop.xlane.xlu1 %1225 }
 0x99a   :  { %v1247_v27 = vsel %vm1239_vm0, %v1235_v6, %v1243_v17  ;;  %v1248_v20 = vsel %vm1240_vm3, %v1236_v8, %v1244_v18  ;;  %v1238_v36 = vadd.f32 %v1234_v9, %v1226_v23 }
 0x99b   :  { %v1251_v26 = vmul.f32 0.17677669, %v1247_v27  ;;  %v1252_v25 = vmul.f32 0.17677669, %v1248_v20  ;;  %vm1241_vm12 = vcmp.gt.f32.partialorder %v1237_v19, 0.0 }
 0x99c   :  { %v1245_v11 = vmul.f32 0.2, %v1237_v19  ;;  %vm1242_vm9 = vcmp.gt.f32.partialorder %v1238_v36, 0.0  ;;  %v1246_v38 = vmul.f32 0.2, %v1238_v36 }
 0x99d   :  { %v1263_v47 = vrot.slane %v1251_v26, %v1892_v50  ;;  %v1267_v29 = vrot.slane %v1252_v25, %v1895_v51 }
 0x99e   :  { %v1249_v39 = vsel %vm1241_vm12, %v1237_v19, %v1245_v11  ;;  %v1250_v41 = vsel %vm1242_vm9, %v1238_v36, %v1246_v38 }
 0x99f   :  { %v1253_v33 = vmul.f32 0.17677669, %v1249_v39  ;;  %v1254_v52 = vmul.f32 0.17677669, %v1250_v41  ;;  %v1268_v55 = vsel %vm200_vm4, %v1267_v29, %v1263_v47  ;;  %v998_v47 = vmul.f32 %v2161_v22, %v2161_v22 }
 0x9a0   :  { %v999_v29 = vmul.f32 %v2163_v46, %v2163_v46 }
 0x9a1   :  { %v1272_v31 = vrot.slane %v1253_v33, %v1892_v50  ;;  %v1276_v7 = vrot.slane %v1254_v52, %v1895_v51 }
 0x9a3   :  { %v1277_v13 = vsel %vm200_vm4, %v1276_v7, %v1272_v31 }
 0x9a4   :  { %v1278_v24 = vsel %vm202_vm13, %v1277_v13, %v1268_v55 }
 0x9a5   :  { %v1280_v56 = vsel %vm1255_vm14, %v1278_v24, -1e+30 }
 0x9a6   :  { %v1281_v59 = vmul.f32 1.442695, %v1280_v56 }
 0x9a8   :  { %1751 = vpow2.f32 %v1281_v59 }
 0x9b5   :  { %v1752_v28 = vpop.eup %1751 }
 0x9b6   :  { %v1283_v60 = vsel %vm1049_vm15, %v1752_v28, 0.0  ;;  %v1300_v16 = vrot.slane %v1752_v28, %v1851_v15  ;;  %v1289_v61 = vrot.slane %v1752_v28, %v1840_v12 }
 0x9b7   :  { %1284 = vadd.xlane.f32.xlu0 %v1283_v60 }
 0x9b8   :  { %1302 = vbcast.lane.b32.xlu1 %v1300_v16, 256 }
 0x9bc   :  { %1291 = vbcast.lane.b32.xlu1 %v1289_v61, 256 }
 0x9c0   :  { %1295 = vbcast.lane.b32.xlu1 %v1289_v61, 264  ;;  %v983_v61 = vmul.f32 1.442695, %v2161_v22 }
 0x9cd   :  { %1306 = vbcast.lane.b32.xlu0 %v1300_v16, 264 }
 0xa2a   :  { %v1303_v45 = vpop.permute.xlu1 %1302 }
 0xa2b   :  { %v1310_v42 = vmul.f32 %v1303_v45, %v2189_v57 }
 0xa2d   :  { %v1321_v9 = vsel %vm118_vm1, %v1310_v42, 0.0  ;;  %v1390_v42 = vld [vmem:[%s2324_s5 + $0x8] sm:$0xff] }
 0xa2e   :  { %v1292_v62 = vpop.permute.xlu1 %1291 }
 0xa2f   :  { %v1308_v63 = vmul.f32 %v1292_v62, %v2180_v53  ;;  %v997_v62 = vmul.f32 %v2159_v44, %v2159_v44 }
 0xa31   :  { %v1312_v1 = vsel %vm118_vm1, %v1308_v63, 0.0 }
 0xa32   :  { %v1296_v37 = vpop.permute.xlu1 %1295 }
 0xa33   :  { %v1309_v48 = vmul.f32 %v1296_v37, %v2191_v58 }
 0xa35   :  { %v1313_v49 = vsel %vm118_vm1, %v1309_v48, 0.0  ;;  %v1000_v48 = vmul.f32 %v2157_v43, %v2157_v43 }
 0xa36   :  { %v1314_v2 = vadd.f32 %v1313_v49, %v1312_v1 }
 0xa38   :  { %v1315_v54 = vrot.slane %v1314_v2, 4 }
 0xa3a   :  { %v1316_v8 = vadd.f32 %v1315_v54, %v1314_v2  ;;  %v1391_v2 = vld [vmem:[%s2324_s5 + $0x10] sm:$0xff] }
 0xa3c   :  { %v1317_v53 = vrot.slane %v1316_v8, 2 }
 0xa3e   :  { %v1318_v19 = vadd.f32 %v1317_v53, %v1316_v8  ;;  %v985_v8 = vmul.f32 1.442695, %v2163_v46 }
 0xa40   :  { %v1285_v3 = vpop.xlane.xlu0 %1284  ;;  %v1319_v36 = vrot.slane %v1318_v19, 1 }
 0xa41   :  { %1753 = vrcp.f32 %v1285_v3  ;;  %v1392_v3 = vld [vmem:[%s2324_s5 + $0x18] sm:$0xff] }
 0xa42   :  { %v1320_v11 = vadd.f32 %v1319_v36, %v1318_v19  ;;  %1755 = vpow2.f32 %v983_v61  ;;  %v1397_v54 = vpack.c.bf16 %v1392_v3, %v1391_v2 }
 0xa44   :  { %v1307_v4 = vpop.permute.xlu0 %1306  ;;  %1648 = vmatpush3.bf16.msra.mxu1 %v1397_v54 }
 0xa45   :  { %v1311_v6 = vmul.f32 %v1307_v4, %v2186_v30  ;;  %1649 = vmatprep.subr.bf16.mxu1 %v1770_v0 }
 0xa47   :  { %v1322_v58 = vsel %vm118_vm1, %v1311_v6, 0.0  ;;  %v981_v6 = vmul.f32 1.442695, %v2159_v44 }
 0xa48   :  { %v1323_v10 = vadd.f32 %v1322_v58, %v1321_v9  ;;  %v987_v9 = vmul.f32 1.442695, %v2157_v43 }
 0xa49   :  { %1757 = vpow2.f32 %v981_v6 }
 0xa4a   :  { %v1324_v17 = vrot.slane %v1323_v10, 4  ;;  %1759 = vpow2.f32 %v985_v8 }
 0xa4b   :  { %1761 = vpow2.f32 %v987_v9 }
 0xa4c   :  { %v1325_v18 = vadd.f32 %v1324_v17, %v1323_v10 }
 0xa4e   :  { %v1326_v23 = vrot.slane %v1325_v18, 2  ;;  %v1754_v20 = vpop.eup %1753 }
 0xa4f   :  { %v1332_v25 = vrot.slane %v1754_v20, 1  ;;  %v1335_v30 = vmul.f32 %v1754_v20, %v1320_v11  ;;  %v1756_v45 = vpop.eup %1755 }
 0xa50   :  { %v1327_v27 = vadd.f32 %v1326_v23, %v1325_v18  ;;  %v990_v37 = vsub.f32 %v1756_v45, %v2161_v22  ;;  %v1389_v22 = vld [vmem:[%s2324_s5] sm:$0xff] }
 0xa51   :  { %v1396_v4 = vpack.c.bf16 %v1390_v42, %v1389_v22 }
 0xa52   :  { %v1328_v26 = vrot.slane %v1327_v27, 1  ;;  %v1549_v49 = vadd.f32 -1.0, %v990_v37 }
 0xa53   :  { %1650 = vmatpush3.bf16.msra.mxu1 %v1396_v4 }
 0xa54   :  { %v1329_v57 = vadd.f32 %v1328_v26, %v1327_v27 }
 0xa56   :  { %v1336_v38 = vmul.f32 %v1332_v25, %v1329_v57  ;;  %v1758_v58 = vpop.eup %1757 }
 0xa57   :  { %v1760_v10 = vpop.eup %1759  ;;  %v989_v53 = vsub.f32 %v1758_v58, %v2159_v44 }
 0xa58   :  { %v1339_v39 = vrot.slane %v1336_v38, 7  ;;  %v1762_v17 = vpop.eup %1761  ;;  %v991_v23 = vsub.f32 %v1760_v10, %v2163_v46 }
 0xa59   :  { %v1548_v27 = vadd.f32 -1.0, %v989_v53  ;;  %v992_v20 = vsub.f32 %v1762_v17, %v2157_v43 }
 0xa5a   :  { %v1340_v41 = vsel %vm202_vm13, %v1339_v39, %v1335_v30  ;;  %v1550_v25 = vadd.f32 -1.0, %v991_v23  ;;  %v1769_v23 = vld [vmem:[%s2322_s1] sm:$0x3] }
 0xa5b   :  { %v1343_v40 = vsel %vm1342_vm5, %v1340_v41, 0.0  ;;  %v1551_v11 = vadd.f32 -1.0, %v992_v20 }
 0xa5c   :  { %1344 = vadd.xlane.f32.xlu1 %v1343_v40 }
 0xa6d   :  { %1007 = vrot.lane.b32.xlu1 %v998_v47, %s1774_s16 }
 0xa71   :  { %1009 = vrot.lane.b32.xlu1 %v999_v29, %s1774_s16  ;;  %v1376_v29 = vrot.slane %v2176_v5, %v2004_v21  ;;  %v1447_v21 = vld [vmem:[%s2324_s5 + $0x38] sm:$0xff] }
 0xae5   :  { %v1345_v33 = vpop.xlane.xlu1 %1344 }
 0xae6   :  { %v1346_v52 = vmul.f32 0.03125, %v1345_v33 }
 0xae8   :  { %v1348_v31 = vrot.slane %v1346_v52, 1  ;;  %v1351_v7 = vsub.f32 %v1335_v30, %v1346_v52  ;;  %v1387_v52 = vrot.slane %v2176_v5, %v2007_v32  ;;  %v1445_v5 = vld [vmem:[%s2324_s5 + $0x28] sm:$0xff] }
 0xae9   :  { %v1008_v63 = vpop.permute.xlu1 %1007 }
 0xaea   :  { %v1352_v55 = vsub.f32 %v1336_v38, %v1348_v31  ;;  %v1353_v56 = vmul.f32 %v1351_v7, %v1351_v7  ;;  %v1018_v1 = vadd.f32 %v1549_v49, %v1008_v63  ;;  %v1559_v63 = vld [vmem:[%s2324_s5 + $0x20] ss:$0 sm:$0xff] }
 0xaec   :  { %v1379_v13 = vrot.slane %v1352_v55, 7  ;;  %v1354_v24 = vmul.f32 %v1352_v55, %v1352_v55 }
 0xaed   :  { %v1010_v57 = vpop.permute.xlu1 %1009 }
 0xaee   :  { %v2233_v59 = vsel %vm202_vm13, %v1379_v13, %v1351_v7  ;;  %v1357_v28 = vrot.slane %v1354_v24, 7  ;;  %v1019_v30 = vadd.f32 %v1550_v25, %v1010_v57 }
 0xaef   :  { %v1382_v33 = vmul.f32 %v2233_v59, %v1376_v29  ;;  %v1448_v59 = vld [vmem:[%s2324_s5 + $0x40] sm:$0xff] }
 0xaf0   :  { %v1358_v60 = vsel %vm202_vm13, %v1357_v28, %v1353_v56  ;;  %v1453_v32 = vpack.c.bf16 %v1448_v59, %v1447_v21 }
 0xaf1   :  { %v1360_v16 = vsel %vm1342_vm5, %v1358_v60, 0.0  ;;  %v1446_v60 = vld [vmem:[%s2324_s5 + $0x30] sm:$0xff] }
 0xaf2   :  { %1361 = vadd.xlane.f32.xlu0 %v1360_v16  ;;  %1656 = vmatpush3.bf16.msra.mxu0 %v1453_v32  ;;  %v1452_v16 = vpack.c.bf16 %v1446_v60, %v1445_v5 }
 0xaf3   :  { %1657 = vmatprep.subr.bf16.mxu0 %v1770_v0 }
 0xaf6   :  { %1658 = vmatpush3.bf16.msra.mxu0 %v1452_v16 }
 0xb08   :  { %1005 = vrot.lane.b32.xlu0 %v997_v62, %s1774_s16 }
 0xb0c   :  { %1011 = vrot.lane.b32.xlu0 %v1000_v48, %s1774_s16 }
 0xb10   :  { %1027 = vrot.lane.b32.xlu0 %v1018_v1, %s1775_s17 }
 0xb7b   :  { %v1362_v18 = vpop.xlane.xlu0 %1361 }
 0xb7c   :  { %v1363_v19 = vmul.f32 0.032258064, %v1362_v18 }
 0xb7e   :  { %1763 = vrsqrt.f32 %v1363_v19  ;;  %vm1366_vm6 = vcmp.eq.f32.partialorder %v1363_v19, inf  ;;  %v1369_v41 = vand.u32 2147483648, %v1363_v19  ;;  %vm1368_vm7 = vcmp.eq.f32.partialorder %v1363_v19, 0.0 }
 0xb7f   :  { %v1006_v36 = vpop.permute.xlu0 %1005 }
 0xb80   :  { %v1017_v26 = vadd.f32 %v1548_v27, %v1006_v36  ;;  %v1050_v27 = vsel %vm1049_vm15, %v1769_v23, 0.0 }
 0xb82   :  { %1025 = vrot.lane.b32.xlu1 %v1017_v26, %s1775_s17 }
 0xb83   :  { %v1012_v38 = vpop.permute.xlu0 %1011 }
 0xb84   :  { %v1020_v39 = vadd.f32 %v1551_v11, %v1012_v38 }
 0xb86   :  { %1031 = vrot.lane.b32.xlu0 %v1020_v39, %s1775_s17  ;;  %1029 = vrot.lane.b32.xlu1 %v1019_v30, %s1775_s17 }
 0xb87   :  { %v1028_v55 = vpop.permute.xlu0 %1027 }
 0xb88   :  { %v1040_v24 = vsel %vm118_vm1, %v1028_v55, 0.0 }
 0xb8b   :  { %v1764_v44 = vpop.eup %1763 }
 0xb8c   :  { %v1365_v46 = vmul.f32 %v1764_v44, %v1363_v19 }
 0xb8e   :  { %v1367_v40 = vsel %vm1366_vm6, %v1363_v19, %v1365_v46 }
 0xb8f   :  { %v1370_v43 = vsel %vm1368_vm7, %v1369_v41, %v1367_v40  ;;  %v1449_v40 = vld [vmem:[%s2324_s5 + $0x48] sm:$0xff] }
 0xb90   :  { %v1371_v47 = vadd.f32 1e-06, %v1370_v43  ;;  %v1457_v43 = vrot.slane %v1449_v40, %v1840_v12  ;;  %v1505_v29 = vrot.slane %v1449_v40, %v1851_v15 }
 0xb92   :  { %1765 = vrcp.f32 %v1371_v47 }
 0xb9f   :  { %v1766_v31 = vpop.eup %1765 }
 0xba0   :  { %v1383_v7 = vmul.f32 %v1766_v31, %v1382_v33 }
 0xba2   :  { %v1388_v13 = vadd.f32 %v1387_v52, %v1383_v7 }
 0xba4   :  { %v1394_v56 = vmax.f32 %v1388_v13, 0.0 }
 0xba5   :  { %1041 = vadd.xlane.f32.xlu0 %v1040_v24 }
 0xba6   :  { %v1395_v28 = vpack.c.bf16 %v1394_v56, %v1394_v56 }
 0xba8   :  { %1652 = vmatmul.mubr.msk.bf16.vlgmr.msra.gmra.mxu1 %vm118_vm1, %v1395_v28  ;;  %v1513_v28 = vrot.slane %v1449_v40, %v1848_v14 }
 0xbf4   :  { %v1026_v61 = vpop.permute.xlu1 %1025 }
 0xbf5   :  { %v1037_v45 = vsel %vm118_vm1, %v1026_v61, 0.0 }
 0xbf6   :  { %1038 = vadd.xlane.f32.xlu1 %v1037_v45 }
 0xbf8   :  { %v1030_v62 = vpop.permute.xlu1 %1029  ;;  %v1032_v48 = vpop.permute.xlu0 %1031 }
 0xbf9   :  { %v1043_v37 = vsel %vm118_vm1, %v1030_v62, 0.0  ;;  %v1046_v0 = vsel %vm118_vm1, %v1032_v48, 0.0 }
 0xbfa   :  { %1044 = vadd.xlane.f32.xlu0 %v1043_v37 }
 0xbfe   :  { %1047 = vadd.xlane.f32.xlu0 %v1046_v0 }
 0xc07   :  { %1058 = vbcast.lane.b32.xlu1 %v1879_v34, 256 }
 0xc0b   :  { %1069 = vbcast.lane.b32.xlu1 %v1883_v35, 256 }
 0xc0f   :  { %1073 = vbcast.lane.b32.xlu1 %v1883_v35, 264 }
 0xc14   :  { %1062 = vbcast.lane.b32.xlu0 %v1879_v34, 264 }
 0xc2e   :  { %v1042_v4 = vpop.xlane.xlu0 %1041 }
 0xc68   :  { %v1439_v49 = vpop.f32.mrf.mxu1 }
 0xc69   :  { %v1440_v1 = vadd.f32 %v1559_v63, %v1439_v49 }
 0xc6a   :  { %v1653_v2 = vpop.f32.mrf.mxu1 }
 0xc6b   :  { %v1450_v3 = vmax.f32 %v1440_v1, 0.0 }
 0xc6c   :  { %v1442_v22 = vpop.f32.mrf.mxu1 }
 0xc6d   :  { %v1451_v54 = vpack.c.bf16 %v1450_v3, %v1450_v3 }
 0xc6e   :  { %v1654_v42 = vpop.f32.mrf.mxu1 }
 0xc6f   :  { %1660 = vmatmul.mubr.msk.bf16.vlgmr.msra.gmra.mxu0 %vm118_vm1, %v1451_v54  ;;  %vm1515_vm1 = vcmask 7168  }
 0xc7f   :  { %v1039_v6 = vpop.xlane.xlu1 %1038 }
 0xc83   :  { %v1045_v8 = vpop.xlane.xlu0 %1044  ;;  %v1059_v9 = vpop.permute.xlu1 %1058 }
 0xc84   :  { %v1079_v35 = vmul.f32 %v1059_v9, %v1039_v6 }
 0xc86   :  { %1088 = vperm.xlu1 %1669, %v1079_v35  }
 0xc87   :  { %v1048_v34 = vpop.xlane.xlu0 %1047  ;;  %v1070_v58 = vpop.permute.xlu1 %1069 }
 0xc88   :  { %v1081_v10 = vmul.f32 %v1070_v58, %v1045_v8 }
 0xc8a   :  { %1094 = vperm.xlu1 %1669, %v1081_v10  }
 0xc8b   :  { %v1063_v53 = vpop.permute.xlu0 %1062  ;;  %v1074_v17 = vpop.permute.xlu1 %1073 }
 0xc8c   :  { %v1080_v18 = vmul.f32 %v1063_v53, %v1042_v4  ;;  %v1082_v19 = vmul.f32 %v1074_v17, %v1048_v34 }
 0xc8e   :  { %1091 = vperm.xlu0 %1670, %v1080_v18   ;;  %1097 = vperm.xlu1 %1669, %v1082_v19  }
 0xcad   :  { %1051 = vadd.xlane.f32.xlu0 %v1050_v27 }
 0xd01   :  { %v1089_v20 = vpop.permute.xlu1 %1088 }
 0xd02   :  { %v1102_v25 = vrot.slane %v1089_v20, %v1892_v50 }
 0xd05   :  { %v1095_v36 = vpop.permute.xlu1 %1094 }
 0xd06   :  { %v1111_v11 = vrot.slane %v1095_v36, %v1892_v50 }
 0xd09   :  { %v1092_v26 = vpop.permute.xlu0 %1091  ;;  %v1098_v57 = vpop.permute.xlu1 %1097 }
 0xd0a   :  { %v1106_v38 = vrot.slane %v1092_v26, %v1895_v51  ;;  %v1115_v30 = vrot.slane %v1098_v57, %v1895_v51 }
 0xd0c   :  { %v1107_v39 = vsel %vm200_vm4, %v1106_v38, %v1102_v25  ;;  %v1116_v44 = vsel %vm200_vm4, %v1115_v30, %v1111_v11  ;;  %vm1517_vm4 = vcmask 15360  }
 0xd0d   :  { %v1117_v46 = vsel %vm202_vm13, %v1116_v44, %v1107_v39 }
 0xd0e   :  { %v1119_v41 = vsel %vm1049_vm15, %v1117_v46, 0.0 }
 0xd0f   :  { %1120 = vadd.xlane.f32.xlu1 %v1119_v41 }
 0xd2f   :  { %v1495_v50 = vpop.f32.mrf.mxu0 }
 0xd30   :  { %v1496_v47 = vadd.f32 %v1495_v50, %v1457_v43 }
 0xd31   :  { %v1661_v51 = vpop.f32.mrf.mxu0 }
 0xd32   :  { %v1501_v33 = vmax.f32 %v1496_v47, 0.0 }
 0xd33   :  { %v1498_v52 = vpop.f32.mrf.mxu0 }
 0xd34   :  { %v1506_v31 = vmul.f32 %v1505_v29, %v1501_v33 }
 0xd35   :  { %v1662_v7 = vpop.f32.mrf.mxu0 }
 0xd36   :  { %v1507_v55 = vsel %vm1342_vm5, %v1506_v31, 0.0  ;;  %v1052_v13 = vpop.xlane.xlu0 %1051 }
 0xd37   :  { %1508 = vadd.xlane.f32.xlu0 %v1507_v55  ;;  %1767 = vrcp.f32 %v1052_v13 }
 0xd44   :  { %v1768_v21 = vpop.eup %1767 }
 0xd98   :  { %v1121_v24 = vpop.xlane.xlu1 %1120 }
 0xd99   :  { %v1122_v56 = vmul.f32 0.5, %v1121_v24 }
 0xd9b   :  { %v1124_v59 = vmul.f32 %v1768_v21, %v1122_v56 }
 0xdc0   :  { %v1509_v12 = vpop.xlane.xlu0 %1508 }
 0xdc1   :  { %v1514_v15 = vadd.f32 %v1513_v28, %v1509_v12 }
 0xdc3   :  { %v1516_v32 = vsel %vm1515_vm1, %v1514_v15, %v1124_v59 }
 0xdc4   :  { %v1518_v5 = vsel %vm1517_vm4, %v1516_v32, 0.0 }
 0xdc5   :  { %1519 = vst [vmem:[%s2325_s6] sm:$0x3] %v1518_v5 }

</bundles_post_ra>
